<compile_context>
chip_gen: v6e
topology: v6e:2x2x1
jax: 0.10.0
libtpu: 0.0.40
codegen_flags: <defaults>
</compile_context>

<pallas_src>
import math
from functools import partial

import jax
import jax.numpy as jnp
from jax import lax
from jax.experimental import pallas as pl
from jax.experimental.pallas import tpu as pltpu

_GN_GROUP = 4
_LEAKY_SLOPE = 0.1
_GN_EPS = 1e-5


# ------------------------- fused TrajEncoder kernel -------------------------

def _make_traj_encoder_kernel(K, Din, Tp, C, H, act, apply_norm, has_bias, eps):
    def kernel(*refs):
        x_ref, w2_ref = refs[0], refs[1]
        idx = 2
        bias_ref = gamma_ref = beta_ref = mcg_ref = mgc_ref = None
        if has_bias:
            bias_ref = refs[idx]; idx += 1
        if apply_norm:
            gamma_ref, beta_ref = refs[idx], refs[idx + 1]
            mcg_ref, mgc_ref = refs[idx + 2], refs[idx + 3]
            idx += 4
        ws_ref, b_ref = refs[idx], refs[idx + 1]
        out_ref = refs[idx + 2]

        x = x_ref[...].astype(jnp.float32)               # (tb, T, Din)
        w2 = w2_ref[...].astype(jnp.float32)             # (K*Din, C)
        tb = x.shape[0]

        # ---- Conv1d ("valid", kernel K) as K*Din broadcast FMAs (pure VPU) ----
        y = jnp.zeros((tb, Tp, C), jnp.float32)
        for k in range(K):
            for d in range(Din):
                r = k * Din + d
                y = y + x[:, k:k + Tp, d:d + 1] * w2[r:r + 1, :][None]

        if has_bias:
            y = y + bias_ref[...][None]                   # (1, 1, C)

        # ---- GroupNorm family (LN / GN / IN) ----
        if apply_norm:
            m_cg = mcg_ref[...]                           # (C, G) one-hot chan->group
            m_gc = mgc_ref[...]                           # (G, C) one-hot group->chan
            G = m_cg.shape[1]
            cnt = jnp.float32(Tp * (C // G))
            dn = (((1,), (0,)), ((), ()))

            row_sum = jnp.sum(y, axis=1)                  # (tb, C)
            sq_sum = jnp.sum(y * y, axis=1)               # (tb, C)
            mean_g = lax.dot_general(row_sum, m_cg, dn,
                                     preferred_element_type=jnp.float32) / cnt
            ex2_g = lax.dot_general(sq_sum, m_cg, dn,
                                    preferred_element_type=jnp.float32) / cnt
            var_g = jnp.maximum(ex2_g - mean_g * mean_g, 0.0)
            rstd_g = lax.rsqrt(var_g + eps)
            mean_c = lax.dot_general(mean_g, m_gc, dn,
                                     preferred_element_type=jnp.float32)  # (tb, C)
            rstd_c = lax.dot_general(rstd_g, m_gc, dn,
                                     preferred_element_type=jnp.float32)  # (tb, C)
            # Fold gamma/beta into a single per-(sample, channel) scale/shift.
            scale = rstd_c * gamma_ref[...]               # (tb, C)
            shift = beta_ref[...] - mean_c * scale        # (tb, C)
            y = y * scale[:, None, :] + shift[:, None, :]

        # ---- activation ----
        if act == 'relu':
            y = jnp.maximum(y, 0.0)
        elif act == 'leaky_relu':
            y = jnp.where(y >= 0.0, y, jnp.float32(_LEAKY_SLOPE) * y)

        # ---- single-layer LSTM, zero-init h/c, fully unrolled recurrence ----
        ws = ws_ref[...]                                  # (C + H, 4H)  [W_ih; W_hh]^T
        b = b_ref[...]                                    # (1, 4H)      b_ih + b_hh
        h = jnp.zeros((tb, H), jnp.float32)
        c = jnp.zeros((tb, H), jnp.float32)
        for t in range(Tp):                               # static unroll (Tp small)
            z = jnp.concatenate([y[:, t, :], h], axis=-1)  # (tb, C + H)
            gates = jnp.dot(z, ws, preferred_element_type=jnp.float32) + b
            i_g = jax.nn.sigmoid(gates[:, 0 * H:1 * H])
            f_g = jax.nn.sigmoid(gates[:, 1 * H:2 * H])
            g_g = jnp.tanh(gates[:, 2 * H:3 * H])
            o_g = jax.nn.sigmoid(gates[:, 3 * H:4 * H])
            c = f_g * c + i_g * g_g
            h = o_g * jnp.tanh(c)

        out_ref[...] = h.astype(out_ref.dtype)

    return kernel


# ----------------------------- TrajEncoder forward ---------------------------

def traj_encoder_forward(x, params, *, norm='GN', act='leaky_relu',
                         batch_tile=None):
    """x: (B, T, dim_in) -> (B, enc_size); matches TrajEncoder.forward (num_layers=1)."""
    B, T, Din = x.shape
    conv_w = params['conv_w']                             # (C, Din, K)
    C, _, K = conv_w.shape
    Tp = T - (K - 1)
    H = params['w_hh'].shape[1]
    apply_norm = norm is not None
    has_bias = params.get('conv_b') is not None
    assert params['w_ih'].shape[1] == C, "LSTM input size must equal embed_size"

    if norm is None or norm == 'LN':
        num_groups = 1
    elif norm == 'GN':
        num_groups = _GN_GROUP
    elif norm == 'IN':
        num_groups = C
    elif norm == 'BN':
        # TODO(synk): BatchNorm1d (cross-batch / running statistics) has no clean
        # per-tile Pallas equivalent here; use 'LN'/'GN'/'IN'.
        raise NotImplementedError("norm='BN' not supported in the Pallas port")
    else:
        raise ValueError(f"unknown norm {norm!r}")

    if apply_norm:
        if params.get('gamma') is None or params.get('beta') is None:
            raise ValueError("norm=%r requires 'gamma' and 'beta' in params" % norm)
        assert C % num_groups == 0

    # Batch tile: big tiles amortize per-grid-step overhead; on v7x pick tb so that
    # B // tb >= 2 (two TensorCores) when B allows it.
    tb = min(B, 256) if batch_tile is None else batch_tile
    assert B % tb == 0, "choose a batch tile that divides B"
    assert tb == B or tb % 8 == 0, "batch tile must be B or a multiple of 8"

    # conv weight as (K*Din, C):  w2[k*Din + d, c] = conv_w[c, d, k]
    w2 = jnp.transpose(conv_w, (2, 1, 0)).reshape(K * Din, C).astype(jnp.float32)
    # stacked LSTM weights (PyTorch layout w_ih (4H, E), w_hh (4H, H); gates i,f,g,o)
    ws = jnp.concatenate([jnp.transpose(params['w_ih']),
                          jnp.transpose(params['w_hh'])], axis=0).astype(jnp.float32)
    b = jnp.reshape(params['b_ih'] + params['b_hh'], (1, 4 * H)).astype(jnp.float32)

    inputs = [x.astype(jnp.float32), w2]
    in_specs = [
        pl.BlockSpec((tb, T, Din), lambda i: (i, 0, 0)),
        pl.BlockSpec((K * Din, C), lambda i: (0, 0)),
    ]
    if has_bias:
        inputs.append(jnp.reshape(params['conv_b'], (1, C)).astype(jnp.float32))
        in_specs.append(pl.BlockSpec((1, C), lambda i: (0, 0)))
    if apply_norm:
        G = num_groups
        cpg = C // G
        ch = jnp.arange(C, dtype=jnp.int32)
        m_cg = (ch[:, None] // cpg ==
                jnp.arange(G, dtype=jnp.int32)[None, :]).astype(jnp.float32)  # (C, G)
        m_gc = jnp.transpose(m_cg)                                            # (G, C)
        inputs += [jnp.reshape(params['gamma'], (1, C)).astype(jnp.float32),
                   jnp.reshape(params['beta'], (1, C)).astype(jnp.float32),
                   m_cg, m_gc]
        in_specs += [pl.BlockSpec((1, C), lambda i: (0, 0)),
                     pl.BlockSpec((1, C), lambda i: (0, 0)),
                     pl.BlockSpec((C, G), lambda i: (0, 0)),
                     pl.BlockSpec((G, C), lambda i: (0, 0))]
    inputs += [ws, b]
    in_specs += [pl.BlockSpec((C + H, 4 * H), lambda i: (0, 0)),
                 pl.BlockSpec((1, 4 * H), lambda i: (0, 0))]

    kernel = _make_traj_encoder_kernel(K, Din, Tp, C, H, act, apply_norm,
                                       has_bias, _GN_EPS)
    return pl.pallas_call(
        kernel,
        out_shape=jax.ShapeDtypeStruct((B, H), jnp.float32),
        grid=(B // tb,),
        in_specs=in_specs,
        out_specs=pl.BlockSpec((tb, H), lambda i: (i, 0)),
        compiler_params=pltpu.CompilerParams(
            dimension_semantics=("parallel",)),
    )(*inputs)


# ------------------------------ pure-JAX reference ---------------------------

def _reference(x, params, *, norm='GN', act='leaky_relu'):
    hp = jax.lax.Precision.HIGHEST
    w = params['conv_w']
    C, Din, K = w.shape
    B, T, _ = x.shape
    Tp = T - K + 1
    y = jnp.zeros((B, Tp, C), jnp.float32)
    for k in range(K):
        y = y + jnp.einsum('btd,cd->btc', x[:, k:k + Tp, :], w[:, :, k],
                           precision=hp)
    if params.get('conv_b') is not None:
        y = y + params['conv_b'][None, None, :]
    if norm is not None:
        G = {'LN': 1, 'GN': _GN_GROUP, 'IN': C}[norm]
        yg = y.reshape(B, Tp, G, C // G)
        mean = yg.mean(axis=(1, 3), keepdims=True)
        var = ((yg - mean) ** 2).mean(axis=(1, 3), keepdims=True)
        y = ((yg - mean) / jnp.sqrt(var + _GN_EPS)).reshape(B, Tp, C)
        y = y * params['gamma'][None, None, :] + params['beta'][None, None, :]
    if act == 'relu':
        y = jnp.maximum(y, 0.0)
    elif act == 'leaky_relu':
        y = jnp.where(y >= 0.0, y, _LEAKY_SLOPE * y)
    seq = jnp.transpose(y, (1, 0, 2))
    H = params['w_hh'].shape[1]

    def step(carry, x_t):
        h, c = carry
        gates = (jnp.dot(x_t, params['w_ih'].T, precision=hp) + params['b_ih']
                 + jnp.dot(h, params['w_hh'].T, precision=hp) + params['b_hh'])
        i, f, g, o = jnp.split(gates, 4, axis=-1)
        c = jax.nn.sigmoid(f) * c + jax.nn.sigmoid(i) * jnp.tanh(g)
        h = jax.nn.sigmoid(o) * jnp.tanh(c)
        return (h, c), None

    init = (jnp.zeros((B, H), jnp.float32), jnp.zeros((B, H), jnp.float32))
    (h_n, _), _ = jax.lax.scan(step, init, seq)
    return h_n


if __name__ == "__main__":
    B, T, dim_in = 2, 16, 2
    embed_size, enc_size = 32, 32
    norm, act = 'GN', 'leaky_relu'

    key = jax.random.PRNGKey(0)
    ks = jax.random.split(key, 8)
    params = {
        'conv_w': 0.3 * jax.random.normal(ks[0], (embed_size, dim_in, 3), jnp.float32),
        'conv_b': None,                               # conv bias disabled when norm is used
        'gamma': 1.0 + 0.1 * jax.random.normal(ks[1], (embed_size,), jnp.float32),
        'beta': 0.1 * jax.random.normal(ks[2], (embed_size,), jnp.float32),
        'w_ih': (1.0 / math.sqrt(enc_size)) *
                jax.random.normal(ks[3], (4 * enc_size, embed_size), jnp.float32),
        'w_hh': (1.0 / math.sqrt(enc_size)) *
                jax.random.normal(ks[4], (4 * enc_size, enc_size), jnp.float32),
        'b_ih': 0.1 * jax.random.normal(ks[5], (4 * enc_size,), jnp.float32),
        'b_hh': 0.1 * jax.random.normal(ks[6], (4 * enc_size,), jnp.float32),
    }
    x = jax.random.normal(ks[7], (B, T, dim_in), jnp.float32)

    out = traj_encoder_forward(x, params, norm=norm, act=act)
    out = jax.block_until_ready(out)
    assert out.shape == (B, enc_size), out.shape

    ref = _reference(x, params, norm=norm, act=act)
    max_err = float(jnp.max(jnp.abs(out - ref)))
    assert jnp.allclose(out, ref, atol=5e-3, rtol=5e-3), f"max |err| = {max_err}"
    print("KERNEL_OK")
</pallas_src>

<mosaic_0001>
module attributes {stable_mosaic.version = 11 : i64} {
  func.func @kernel(%arg0: i32, %arg1: memref<2x16x2xf32, #tpu.memory_space<vmem>>, %arg2: memref<6x32xf32, #tpu.memory_space<vmem>>, %arg3: memref<1x32xf32, #tpu.memory_space<vmem>>, %arg4: memref<1x32xf32, #tpu.memory_space<vmem>>, %arg5: memref<32x4xf32, #tpu.memory_space<vmem>>, %arg6: memref<4x32xf32, #tpu.memory_space<vmem>>, %arg7: memref<64x128xf32, #tpu.memory_space<vmem>>, %arg8: memref<1x128xf32, #tpu.memory_space<vmem>>, %arg9: memref<2x32xf32, #tpu.memory_space<vmem>>) attributes {dimension_semantics = [#tpu.dimension_semantics<parallel>], iteration_bounds = array<i64: 1>, scalar_prefetch = 0 : i64, scratch_operands = 0 : i64, tpu.core_type = #tpu.core_type<tc>, window_params = [{transform_indices = @transform_0, window_bounds = array<i64: 2, 16, 2>}, {pipeline_mode = #tpu.pipeline_mode<synchronous>, transform_indices = @transform_1, window_bounds = array<i64: 6, 32>}, {pipeline_mode = #tpu.pipeline_mode<synchronous>, transform_indices = @transform_2, window_bounds = array<i64: 1, 32>}, {pipeline_mode = #tpu.pipeline_mode<synchronous>, transform_indices = @transform_3, window_bounds = array<i64: 1, 32>}, {pipeline_mode = #tpu.pipeline_mode<synchronous>, transform_indices = @transform_4, window_bounds = array<i64: 32, 4>}, {pipeline_mode = #tpu.pipeline_mode<synchronous>, transform_indices = @transform_5, window_bounds = array<i64: 4, 32>}, {pipeline_mode = #tpu.pipeline_mode<synchronous>, transform_indices = @transform_6, window_bounds = array<i64: 64, 128>}, {pipeline_mode = #tpu.pipeline_mode<synchronous>, transform_indices = @transform_7, window_bounds = array<i64: 1, 128>}, {transform_indices = @transform_8, window_bounds = array<i64: 2, 32>}]} {
    %c0 = arith.constant 0 : index
    %c0_0 = arith.constant 0 : index
    %c0_1 = arith.constant 0 : index
    %0 = vector.load %arg1[%c0, %c0_0, %c0_1] : memref<2x16x2xf32, #tpu.memory_space<vmem>>, vector<2x16x2xf32>
    %c0_2 = arith.constant 0 : index
    %c0_3 = arith.constant 0 : index
    %1 = vector.load %arg2[%c0_2, %c0_3] : memref<6x32xf32, #tpu.memory_space<vmem>>, vector<6x32xf32>
    %cst = arith.constant 0.000000e+00 : f32
    %2 = vector.broadcast %cst : f32 to vector<2x14x32xf32>
    %3 = vector.extract_strided_slice %0 {offsets = [0, 0, 0], sizes = [2, 14, 1], strides = [1, 1, 1]} : vector<2x16x2xf32> to vector<2x14x1xf32>
    %4 = vector.extract_strided_slice %1 {offsets = [0, 0], sizes = [1, 32], strides = [1, 1]} : vector<6x32xf32> to vector<1x32xf32>
    %5 = vector.shape_cast %4 : vector<1x32xf32> to vector<1x1x32xf32>
    %6 = vector.broadcast %3 : vector<2x14x1xf32> to vector<2x14x32xf32>
    %7 = vector.broadcast %5 : vector<1x1x32xf32> to vector<2x14x32xf32>
    %8 = arith.mulf %6, %7 : vector<2x14x32xf32>
    %9 = arith.addf %2, %8 : vector<2x14x32xf32>
    %10 = vector.extract_strided_slice %0 {offsets = [0, 0, 1], sizes = [2, 14, 1], strides = [1, 1, 1]} : vector<2x16x2xf32> to vector<2x14x1xf32>
    %11 = vector.extract_strided_slice %1 {offsets = [1, 0], sizes = [1, 32], strides = [1, 1]} : vector<6x32xf32> to vector<1x32xf32>
    %12 = vector.shape_cast %11 : vector<1x32xf32> to vector<1x1x32xf32>
    %13 = vector.broadcast %10 : vector<2x14x1xf32> to vector<2x14x32xf32>
    %14 = vector.broadcast %12 : vector<1x1x32xf32> to vector<2x14x32xf32>
    %15 = arith.mulf %13, %14 : vector<2x14x32xf32>
    %16 = arith.addf %9, %15 : vector<2x14x32xf32>
    %17 = vector.extract_strided_slice %0 {offsets = [0, 1, 0], sizes = [2, 14, 1], strides = [1, 1, 1]} : vector<2x16x2xf32> to vector<2x14x1xf32>
    %18 = vector.extract_strided_slice %1 {offsets = [2, 0], sizes = [1, 32], strides = [1, 1]} : vector<6x32xf32> to vector<1x32xf32>
    %19 = vector.shape_cast %18 : vector<1x32xf32> to vector<1x1x32xf32>
    %20 = vector.broadcast %17 : vector<2x14x1xf32> to vector<2x14x32xf32>
    %21 = vector.broadcast %19 : vector<1x1x32xf32> to vector<2x14x32xf32>
    %22 = arith.mulf %20, %21 : vector<2x14x32xf32>
    %23 = arith.addf %16, %22 : vector<2x14x32xf32>
    %24 = vector.extract_strided_slice %0 {offsets = [0, 1, 1], sizes = [2, 14, 1], strides = [1, 1, 1]} : vector<2x16x2xf32> to vector<2x14x1xf32>
    %25 = vector.extract_strided_slice %1 {offsets = [3, 0], sizes = [1, 32], strides = [1, 1]} : vector<6x32xf32> to vector<1x32xf32>
    %26 = vector.shape_cast %25 : vector<1x32xf32> to vector<1x1x32xf32>
    %27 = vector.broadcast %24 : vector<2x14x1xf32> to vector<2x14x32xf32>
    %28 = vector.broadcast %26 : vector<1x1x32xf32> to vector<2x14x32xf32>
    %29 = arith.mulf %27, %28 : vector<2x14x32xf32>
    %30 = arith.addf %23, %29 : vector<2x14x32xf32>
    %31 = vector.extract_strided_slice %0 {offsets = [0, 2, 0], sizes = [2, 14, 1], strides = [1, 1, 1]} : vector<2x16x2xf32> to vector<2x14x1xf32>
    %32 = vector.extract_strided_slice %1 {offsets = [4, 0], sizes = [1, 32], strides = [1, 1]} : vector<6x32xf32> to vector<1x32xf32>
    %33 = vector.shape_cast %32 : vector<1x32xf32> to vector<1x1x32xf32>
    %34 = vector.broadcast %31 : vector<2x14x1xf32> to vector<2x14x32xf32>
    %35 = vector.broadcast %33 : vector<1x1x32xf32> to vector<2x14x32xf32>
    %36 = arith.mulf %34, %35 : vector<2x14x32xf32>
    %37 = arith.addf %30, %36 : vector<2x14x32xf32>
    %38 = vector.extract_strided_slice %0 {offsets = [0, 2, 1], sizes = [2, 14, 1], strides = [1, 1, 1]} : vector<2x16x2xf32> to vector<2x14x1xf32>
    %39 = vector.extract_strided_slice %1 {offsets = [5, 0], sizes = [1, 32], strides = [1, 1]} : vector<6x32xf32> to vector<1x32xf32>
    %40 = vector.shape_cast %39 : vector<1x32xf32> to vector<1x1x32xf32>
    %41 = vector.broadcast %38 : vector<2x14x1xf32> to vector<2x14x32xf32>
    %42 = vector.broadcast %40 : vector<1x1x32xf32> to vector<2x14x32xf32>
    %43 = arith.mulf %41, %42 : vector<2x14x32xf32>
    %44 = arith.addf %37, %43 : vector<2x14x32xf32>
    %c0_4 = arith.constant 0 : index
    %c0_5 = arith.constant 0 : index
    %45 = vector.load %arg5[%c0_4, %c0_5] : memref<32x4xf32, #tpu.memory_space<vmem>>, vector<32x4xf32>
    %c0_6 = arith.constant 0 : index
    %c0_7 = arith.constant 0 : index
    %46 = vector.load %arg6[%c0_6, %c0_7] : memref<4x32xf32, #tpu.memory_space<vmem>>, vector<4x32xf32>
    %cst_8 = arith.constant dense<0.000000e+00> : vector<2x32xf32>
    %47 = vector.multi_reduction <add>, %44, %cst_8 [1] : vector<2x14x32xf32> to vector<2x32xf32>
    %48 = arith.mulf %44, %44 : vector<2x14x32xf32>
    %cst_9 = arith.constant dense<0.000000e+00> : vector<2x32xf32>
    %49 = vector.multi_reduction <add>, %48, %cst_9 [1] : vector<2x14x32xf32> to vector<2x32xf32>
    %cst_10 = arith.constant dense<0.000000e+00> : vector<2x4xf32>
    %50 = tpu.matmul %47, %45, %cst_10 {dimension_numbers = #tpu.dot_dimension_numbers<[1], [0], [0], [1], [0, 0, 1, 1], [], []>} : vector<2x32xf32>, vector<32x4xf32>, vector<2x4xf32> -> vector<2x4xf32>
    %cst_11 = arith.constant 1.120000e+02 : f32
    %51 = vector.broadcast %cst_11 : f32 to vector<2x4xf32>
    %52 = arith.divf %50, %51 : vector<2x4xf32>
    %cst_12 = arith.constant dense<0.000000e+00> : vector<2x4xf32>
    %53 = tpu.matmul %49, %45, %cst_12 {dimension_numbers = #tpu.dot_dimension_numbers<[1], [0], [0], [1], [0, 0, 1, 1], [], []>} : vector<2x32xf32>, vector<32x4xf32>, vector<2x4xf32> -> vector<2x4xf32>
    %cst_13 = arith.constant 1.120000e+02 : f32
    %54 = vector.broadcast %cst_13 : f32 to vector<2x4xf32>
    %55 = arith.divf %53, %54 : vector<2x4xf32>
    %56 = arith.mulf %52, %52 : vector<2x4xf32>
    %57 = arith.subf %55, %56 : vector<2x4xf32>
    %cst_14 = arith.constant 0.000000e+00 : f32
    %58 = vector.broadcast %cst_14 : f32 to vector<2x4xf32>
    %59 = arith.maximumf %57, %58 : vector<2x4xf32>
    %cst_15 = arith.constant 9.99999974E-6 : f32
    %60 = vector.broadcast %cst_15 : f32 to vector<2x4xf32>
    %61 = arith.addf %59, %60 : vector<2x4xf32>
    %62 = math.rsqrt %61 : vector<2x4xf32>
    %cst_16 = arith.constant dense<0.000000e+00> : vector<2x32xf32>
    %63 = tpu.matmul %52, %46, %cst_16 {dimension_numbers = #tpu.dot_dimension_numbers<[1], [0], [0], [1], [0, 0, 1, 1], [], []>} : vector<2x4xf32>, vector<4x32xf32>, vector<2x32xf32> -> vector<2x32xf32>
    %cst_17 = arith.constant dense<0.000000e+00> : vector<2x32xf32>
    %64 = tpu.matmul %62, %46, %cst_17 {dimension_numbers = #tpu.dot_dimension_numbers<[1], [0], [0], [1], [0, 0, 1, 1], [], []>} : vector<2x4xf32>, vector<4x32xf32>, vector<2x32xf32> -> vector<2x32xf32>
    %c0_18 = arith.constant 0 : index
    %c0_19 = arith.constant 0 : index
    %65 = vector.load %arg3[%c0_18, %c0_19] : memref<1x32xf32, #tpu.memory_space<vmem>>, vector<1x32xf32>
    %66 = vector.broadcast %65 : vector<1x32xf32> to vector<2x32xf32>
    %67 = arith.mulf %64, %66 : vector<2x32xf32>
    %c0_20 = arith.constant 0 : index
    %c0_21 = arith.constant 0 : index
    %68 = vector.load %arg4[%c0_20, %c0_21] : memref<1x32xf32, #tpu.memory_space<vmem>>, vector<1x32xf32>
    %69 = arith.mulf %63, %67 : vector<2x32xf32>
    %70 = vector.broadcast %68 : vector<1x32xf32> to vector<2x32xf32>
    %71 = arith.subf %70, %69 : vector<2x32xf32>
    %72 = vector.shape_cast %67 : vector<2x32xf32> to vector<2x1x32xf32>
    %73 = vector.broadcast %72 : vector<2x1x32xf32> to vector<2x14x32xf32>
    %74 = arith.mulf %44, %73 : vector<2x14x32xf32>
    %75 = vector.shape_cast %71 : vector<2x32xf32> to vector<2x1x32xf32>
    %76 = vector.broadcast %75 : vector<2x1x32xf32> to vector<2x14x32xf32>
    %77 = arith.addf %74, %76 : vector<2x14x32xf32>
    %cst_22 = arith.constant 0.000000e+00 : f32
    %78 = vector.broadcast %cst_22 : f32 to vector<2x14x32xf32>
    %79 = arith.cmpf oge, %77, %78 : vector<2x14x32xf32>
    %cst_23 = arith.constant 1.000000e-01 : f32
    %80 = vector.broadcast %cst_23 : f32 to vector<2x14x32xf32>
    %81 = arith.mulf %80, %77 : vector<2x14x32xf32>
    %82 = arith.select %79, %77, %81 : vector<2x14x32xi1>, vector<2x14x32xf32>
    %c0_24 = arith.constant 0 : index
    %c0_25 = arith.constant 0 : index
    %83 = vector.load %arg7[%c0_24, %c0_25] : memref<64x128xf32, #tpu.memory_space<vmem>>, vector<64x128xf32>
    %c0_26 = arith.constant 0 : index
    %c0_27 = arith.constant 0 : index
    %84 = vector.load %arg8[%c0_26, %c0_27] : memref<1x128xf32, #tpu.memory_space<vmem>>, vector<1x128xf32>
    %cst_28 = arith.constant 0.000000e+00 : f32
    %85 = vector.broadcast %cst_28 : f32 to vector<2x32xf32>
    %cst_29 = arith.constant 0.000000e+00 : f32
    %86 = vector.broadcast %cst_29 : f32 to vector<2x32xf32>
    %87 = vector.extract_strided_slice %82 {offsets = [0, 0, 0], sizes = [2, 1, 32], strides = [1, 1, 1]} : vector<2x14x32xf32> to vector<2x1x32xf32>
    %88 = vector.shape_cast %87 : vector<2x1x32xf32> to vector<2x32xf32>
    %89 = tpu.concatenate %88, %85 in 1 : vector<2x32xf32>, vector<2x32xf32> -> vector<2x64xf32>
    %cst_30 = arith.constant dense<0.000000e+00> : vector<2x128xf32>
    %90 = tpu.matmul %89, %83, %cst_30 {dimension_numbers = #tpu.dot_dimension_numbers<[1], [0], [0], [1], [0, 0, 1, 1], [], []>} : vector<2x64xf32>, vector<64x128xf32>, vector<2x128xf32> -> vector<2x128xf32>
    %91 = vector.broadcast %84 : vector<1x128xf32> to vector<2x128xf32>
    %92 = arith.addf %90, %91 : vector<2x128xf32>
    %93 = vector.extract_strided_slice %92 {offsets = [0, 0], sizes = [2, 32], strides = [1, 1]} : vector<2x128xf32> to vector<2x32xf32>
    %94 = arith.negf %93 : vector<2x32xf32>
    %95 = math.exp %94 : vector<2x32xf32>
    %cst_31 = arith.constant 1.000000e+00 : f32
    %96 = vector.broadcast %cst_31 : f32 to vector<2x32xf32>
    %97 = arith.addf %96, %95 : vector<2x32xf32>
    %98 = arith.divf %96, %97 : vector<2x32xf32>
    %99 = vector.extract_strided_slice %92 {offsets = [0, 32], sizes = [2, 32], strides = [1, 1]} : vector<2x128xf32> to vector<2x32xf32>
    %100 = arith.negf %99 : vector<2x32xf32>
    %101 = math.exp %100 : vector<2x32xf32>
    %cst_32 = arith.constant 1.000000e+00 : f32
    %102 = vector.broadcast %cst_32 : f32 to vector<2x32xf32>
    %103 = arith.addf %102, %101 : vector<2x32xf32>
    %104 = arith.divf %102, %103 : vector<2x32xf32>
    %105 = vector.extract_strided_slice %92 {offsets = [0, 64], sizes = [2, 32], strides = [1, 1]} : vector<2x128xf32> to vector<2x32xf32>
    %106 = math.tanh %105 : vector<2x32xf32>
    %107 = vector.extract_strided_slice %92 {offsets = [0, 96], sizes = [2, 32], strides = [1, 1]} : vector<2x128xf32> to vector<2x32xf32>
    %108 = arith.negf %107 : vector<2x32xf32>
    %109 = math.exp %108 : vector<2x32xf32>
    %cst_33 = arith.constant 1.000000e+00 : f32
    %110 = vector.broadcast %cst_33 : f32 to vector<2x32xf32>
    %111 = arith.addf %110, %109 : vector<2x32xf32>
    %112 = arith.divf %110, %111 : vector<2x32xf32>
    %113 = arith.mulf %104, %86 : vector<2x32xf32>
    %114 = arith.mulf %98, %106 : vector<2x32xf32>
    %115 = arith.addf %113, %114 : vector<2x32xf32>
    %116 = math.tanh %115 : vector<2x32xf32>
    %117 = arith.mulf %112, %116 : vector<2x32xf32>
    %118 = vector.extract_strided_slice %82 {offsets = [0, 1, 0], sizes = [2, 1, 32], strides = [1, 1, 1]} : vector<2x14x32xf32> to vector<2x1x32xf32>
    %119 = vector.shape_cast %118 : vector<2x1x32xf32> to vector<2x32xf32>
    %120 = tpu.concatenate %119, %117 in 1 : vector<2x32xf32>, vector<2x32xf32> -> vector<2x64xf32>
    %cst_34 = arith.constant dense<0.000000e+00> : vector<2x128xf32>
    %121 = tpu.matmul %120, %83, %cst_34 {dimension_numbers = #tpu.dot_dimension_numbers<[1], [0], [0], [1], [0, 0, 1, 1], [], []>} : vector<2x64xf32>, vector<64x128xf32>, vector<2x128xf32> -> vector<2x128xf32>
    %122 = vector.broadcast %84 : vector<1x128xf32> to vector<2x128xf32>
    %123 = arith.addf %121, %122 : vector<2x128xf32>
    %124 = vector.extract_strided_slice %123 {offsets = [0, 0], sizes = [2, 32], strides = [1, 1]} : vector<2x128xf32> to vector<2x32xf32>
    %125 = arith.negf %124 : vector<2x32xf32>
    %126 = math.exp %125 : vector<2x32xf32>
    %cst_35 = arith.constant 1.000000e+00 : f32
    %127 = vector.broadcast %cst_35 : f32 to vector<2x32xf32>
    %128 = arith.addf %127, %126 : vector<2x32xf32>
    %129 = arith.divf %127, %128 : vector<2x32xf32>
    %130 = vector.extract_strided_slice %123 {offsets = [0, 32], sizes = [2, 32], strides = [1, 1]} : vector<2x128xf32> to vector<2x32xf32>
    %131 = arith.negf %130 : vector<2x32xf32>
    %132 = math.exp %131 : vector<2x32xf32>
    %cst_36 = arith.constant 1.000000e+00 : f32
    %133 = vector.broadcast %cst_36 : f32 to vector<2x32xf32>
    %134 = arith.addf %133, %132 : vector<2x32xf32>
    %135 = arith.divf %133, %134 : vector<2x32xf32>
    %136 = vector.extract_strided_slice %123 {offsets = [0, 64], sizes = [2, 32], strides = [1, 1]} : vector<2x128xf32> to vector<2x32xf32>
    %137 = math.tanh %136 : vector<2x32xf32>
    %138 = vector.extract_strided_slice %123 {offsets = [0, 96], sizes = [2, 32], strides = [1, 1]} : vector<2x128xf32> to vector<2x32xf32>
    %139 = arith.negf %138 : vector<2x32xf32>
    %140 = math.exp %139 : vector<2x32xf32>
    %cst_37 = arith.constant 1.000000e+00 : f32
    %141 = vector.broadcast %cst_37 : f32 to vector<2x32xf32>
    %142 = arith.addf %141, %140 : vector<2x32xf32>
    %143 = arith.divf %141, %142 : vector<2x32xf32>
    %144 = arith.mulf %135, %115 : vector<2x32xf32>
    %145 = arith.mulf %129, %137 : vector<2x32xf32>
    %146 = arith.addf %144, %145 : vector<2x32xf32>
    %147 = math.tanh %146 : vector<2x32xf32>
    %148 = arith.mulf %143, %147 : vector<2x32xf32>
    %149 = vector.extract_strided_slice %82 {offsets = [0, 2, 0], sizes = [2, 1, 32], strides = [1, 1, 1]} : vector<2x14x32xf32> to vector<2x1x32xf32>
    %150 = vector.shape_cast %149 : vector<2x1x32xf32> to vector<2x32xf32>
    %151 = tpu.concatenate %150, %148 in 1 : vector<2x32xf32>, vector<2x32xf32> -> vector<2x64xf32>
    %cst_38 = arith.constant dense<0.000000e+00> : vector<2x128xf32>
    %152 = tpu.matmul %151, %83, %cst_38 {dimension_numbers = #tpu.dot_dimension_numbers<[1], [0], [0], [1], [0, 0, 1, 1], [], []>} : vector<2x64xf32>, vector<64x128xf32>, vector<2x128xf32> -> vector<2x128xf32>
    %153 = vector.broadcast %84 : vector<1x128xf32> to vector<2x128xf32>
    %154 = arith.addf %152, %153 : vector<2x128xf32>
    %155 = vector.extract_strided_slice %154 {offsets = [0, 0], sizes = [2, 32], strides = [1, 1]} : vector<2x128xf32> to vector<2x32xf32>
    %156 = arith.negf %155 : vector<2x32xf32>
    %157 = math.exp %156 : vector<2x32xf32>
    %cst_39 = arith.constant 1.000000e+00 : f32
    %158 = vector.broadcast %cst_39 : f32 to vector<2x32xf32>
    %159 = arith.addf %158, %157 : vector<2x32xf32>
    %160 = arith.divf %158, %159 : vector<2x32xf32>
    %161 = vector.extract_strided_slice %154 {offsets = [0, 32], sizes = [2, 32], strides = [1, 1]} : vector<2x128xf32> to vector<2x32xf32>
    %162 = arith.negf %161 : vector<2x32xf32>
    %163 = math.exp %162 : vector<2x32xf32>
    %cst_40 = arith.constant 1.000000e+00 : f32
    %164 = vector.broadcast %cst_40 : f32 to vector<2x32xf32>
    %165 = arith.addf %164, %163 : vector<2x32xf32>
    %166 = arith.divf %164, %165 : vector<2x32xf32>
    %167 = vector.extract_strided_slice %154 {offsets = [0, 64], sizes = [2, 32], strides = [1, 1]} : vector<2x128xf32> to vector<2x32xf32>
    %168 = math.tanh %167 : vector<2x32xf32>
    %169 = vector.extract_strided_slice %154 {offsets = [0, 96], sizes = [2, 32], strides = [1, 1]} : vector<2x128xf32> to vector<2x32xf32>
    %170 = arith.negf %169 : vector<2x32xf32>
    %171 = math.exp %170 : vector<2x32xf32>
    %cst_41 = arith.constant 1.000000e+00 : f32
    %172 = vector.broadcast %cst_41 : f32 to vector<2x32xf32>
    %173 = arith.addf %172, %171 : vector<2x32xf32>
    %174 = arith.divf %172, %173 : vector<2x32xf32>
    %175 = arith.mulf %166, %146 : vector<2x32xf32>
    %176 = arith.mulf %160, %168 : vector<2x32xf32>
    %177 = arith.addf %175, %176 : vector<2x32xf32>
    %178 = math.tanh %177 : vector<2x32xf32>
    %179 = arith.mulf %174, %178 : vector<2x32xf32>
    %180 = vector.extract_strided_slice %82 {offsets = [0, 3, 0], sizes = [2, 1, 32], strides = [1, 1, 1]} : vector<2x14x32xf32> to vector<2x1x32xf32>
    %181 = vector.shape_cast %180 : vector<2x1x32xf32> to vector<2x32xf32>
    %182 = tpu.concatenate %181, %179 in 1 : vector<2x32xf32>, vector<2x32xf32> -> vector<2x64xf32>
    %cst_42 = arith.constant dense<0.000000e+00> : vector<2x128xf32>
    %183 = tpu.matmul %182, %83, %cst_42 {dimension_numbers = #tpu.dot_dimension_numbers<[1], [0], [0], [1], [0, 0, 1, 1], [], []>} : vector<2x64xf32>, vector<64x128xf32>, vector<2x128xf32> -> vector<2x128xf32>
    %184 = vector.broadcast %84 : vector<1x128xf32> to vector<2x128xf32>
    %185 = arith.addf %183, %184 : vector<2x128xf32>
    %186 = vector.extract_strided_slice %185 {offsets = [0, 0], sizes = [2, 32], strides = [1, 1]} : vector<2x128xf32> to vector<2x32xf32>
    %187 = arith.negf %186 : vector<2x32xf32>
    %188 = math.exp %187 : vector<2x32xf32>
    %cst_43 = arith.constant 1.000000e+00 : f32
    %189 = vector.broadcast %cst_43 : f32 to vector<2x32xf32>
    %190 = arith.addf %189, %188 : vector<2x32xf32>
    %191 = arith.divf %189, %190 : vector<2x32xf32>
    %192 = vector.extract_strided_slice %185 {offsets = [0, 32], sizes = [2, 32], strides = [1, 1]} : vector<2x128xf32> to vector<2x32xf32>
    %193 = arith.negf %192 : vector<2x32xf32>
    %194 = math.exp %193 : vector<2x32xf32>
    %cst_44 = arith.constant 1.000000e+00 : f32
    %195 = vector.broadcast %cst_44 : f32 to vector<2x32xf32>
    %196 = arith.addf %195, %194 : vector<2x32xf32>
    %197 = arith.divf %195, %196 : vector<2x32xf32>
    %198 = vector.extract_strided_slice %185 {offsets = [0, 64], sizes = [2, 32], strides = [1, 1]} : vector<2x128xf32> to vector<2x32xf32>
    %199 = math.tanh %198 : vector<2x32xf32>
    %200 = vector.extract_strided_slice %185 {offsets = [0, 96], sizes = [2, 32], strides = [1, 1]} : vector<2x128xf32> to vector<2x32xf32>
    %201 = arith.negf %200 : vector<2x32xf32>
    %202 = math.exp %201 : vector<2x32xf32>
    %cst_45 = arith.constant 1.000000e+00 : f32
    %203 = vector.broadcast %cst_45 : f32 to vector<2x32xf32>
    %204 = arith.addf %203, %202 : vector<2x32xf32>
    %205 = arith.divf %203, %204 : vector<2x32xf32>
    %206 = arith.mulf %197, %177 : vector<2x32xf32>
    %207 = arith.mulf %191, %199 : vector<2x32xf32>
    %208 = arith.addf %206, %207 : vector<2x32xf32>
    %209 = math.tanh %208 : vector<2x32xf32>
    %210 = arith.mulf %205, %209 : vector<2x32xf32>
    %211 = vector.extract_strided_slice %82 {offsets = [0, 4, 0], sizes = [2, 1, 32], strides = [1, 1, 1]} : vector<2x14x32xf32> to vector<2x1x32xf32>
    %212 = vector.shape_cast %211 : vector<2x1x32xf32> to vector<2x32xf32>
    %213 = tpu.concatenate %212, %210 in 1 : vector<2x32xf32>, vector<2x32xf32> -> vector<2x64xf32>
    %cst_46 = arith.constant dense<0.000000e+00> : vector<2x128xf32>
    %214 = tpu.matmul %213, %83, %cst_46 {dimension_numbers = #tpu.dot_dimension_numbers<[1], [0], [0], [1], [0, 0, 1, 1], [], []>} : vector<2x64xf32>, vector<64x128xf32>, vector<2x128xf32> -> vector<2x128xf32>
    %215 = vector.broadcast %84 : vector<1x128xf32> to vector<2x128xf32>
    %216 = arith.addf %214, %215 : vector<2x128xf32>
    %217 = vector.extract_strided_slice %216 {offsets = [0, 0], sizes = [2, 32], strides = [1, 1]} : vector<2x128xf32> to vector<2x32xf32>
    %218 = arith.negf %217 : vector<2x32xf32>
    %219 = math.exp %218 : vector<2x32xf32>
    %cst_47 = arith.constant 1.000000e+00 : f32
    %220 = vector.broadcast %cst_47 : f32 to vector<2x32xf32>
    %221 = arith.addf %220, %219 : vector<2x32xf32>
    %222 = arith.divf %220, %221 : vector<2x32xf32>
    %223 = vector.extract_strided_slice %216 {offsets = [0, 32], sizes = [2, 32], strides = [1, 1]} : vector<2x128xf32> to vector<2x32xf32>
    %224 = arith.negf %223 : vector<2x32xf32>
    %225 = math.exp %224 : vector<2x32xf32>
    %cst_48 = arith.constant 1.000000e+00 : f32
    %226 = vector.broadcast %cst_48 : f32 to vector<2x32xf32>
    %227 = arith.addf %226, %225 : vector<2x32xf32>
    %228 = arith.divf %226, %227 : vector<2x32xf32>
    %229 = vector.extract_strided_slice %216 {offsets = [0, 64], sizes = [2, 32], strides = [1, 1]} : vector<2x128xf32> to vector<2x32xf32>
    %230 = math.tanh %229 : vector<2x32xf32>
    %231 = vector.extract_strided_slice %216 {offsets = [0, 96], sizes = [2, 32], strides = [1, 1]} : vector<2x128xf32> to vector<2x32xf32>
    %232 = arith.negf %231 : vector<2x32xf32>
    %233 = math.exp %232 : vector<2x32xf32>
    %cst_49 = arith.constant 1.000000e+00 : f32
    %234 = vector.broadcast %cst_49 : f32 to vector<2x32xf32>
    %235 = arith.addf %234, %233 : vector<2x32xf32>
    %236 = arith.divf %234, %235 : vector<2x32xf32>
    %237 = arith.mulf %228, %208 : vector<2x32xf32>
    %238 = arith.mulf %222, %230 : vector<2x32xf32>
    %239 = arith.addf %237, %238 : vector<2x32xf32>
    %240 = math.tanh %239 : vector<2x32xf32>
    %241 = arith.mulf %236, %240 : vector<2x32xf32>
    %242 = vector.extract_strided_slice %82 {offsets = [0, 5, 0], sizes = [2, 1, 32], strides = [1, 1, 1]} : vector<2x14x32xf32> to vector<2x1x32xf32>
    %243 = vector.shape_cast %242 : vector<2x1x32xf32> to vector<2x32xf32>
    %244 = tpu.concatenate %243, %241 in 1 : vector<2x32xf32>, vector<2x32xf32> -> vector<2x64xf32>
    %cst_50 = arith.constant dense<0.000000e+00> : vector<2x128xf32>
    %245 = tpu.matmul %244, %83, %cst_50 {dimension_numbers = #tpu.dot_dimension_numbers<[1], [0], [0], [1], [0, 0, 1, 1], [], []>} : vector<2x64xf32>, vector<64x128xf32>, vector<2x128xf32> -> vector<2x128xf32>
    %246 = vector.broadcast %84 : vector<1x128xf32> to vector<2x128xf32>
    %247 = arith.addf %245, %246 : vector<2x128xf32>
    %248 = vector.extract_strided_slice %247 {offsets = [0, 0], sizes = [2, 32], strides = [1, 1]} : vector<2x128xf32> to vector<2x32xf32>
    %249 = arith.negf %248 : vector<2x32xf32>
    %250 = math.exp %249 : vector<2x32xf32>
    %cst_51 = arith.constant 1.000000e+00 : f32
    %251 = vector.broadcast %cst_51 : f32 to vector<2x32xf32>
    %252 = arith.addf %251, %250 : vector<2x32xf32>
    %253 = arith.divf %251, %252 : vector<2x32xf32>
    %254 = vector.extract_strided_slice %247 {offsets = [0, 32], sizes = [2, 32], strides = [1, 1]} : vector<2x128xf32> to vector<2x32xf32>
    %255 = arith.negf %254 : vector<2x32xf32>
    %256 = math.exp %255 : vector<2x32xf32>
    %cst_52 = arith.constant 1.000000e+00 : f32
    %257 = vector.broadcast %cst_52 : f32 to vector<2x32xf32>
    %258 = arith.addf %257, %256 : vector<2x32xf32>
    %259 = arith.divf %257, %258 : vector<2x32xf32>
    %260 = vector.extract_strided_slice %247 {offsets = [0, 64], sizes = [2, 32], strides = [1, 1]} : vector<2x128xf32> to vector<2x32xf32>
    %261 = math.tanh %260 : vector<2x32xf32>
    %262 = vector.extract_strided_slice %247 {offsets = [0, 96], sizes = [2, 32], strides = [1, 1]} : vector<2x128xf32> to vector<2x32xf32>
    %263 = arith.negf %262 : vector<2x32xf32>
    %264 = math.exp %263 : vector<2x32xf32>
    %cst_53 = arith.constant 1.000000e+00 : f32
    %265 = vector.broadcast %cst_53 : f32 to vector<2x32xf32>
    %266 = arith.addf %265, %264 : vector<2x32xf32>
    %267 = arith.divf %265, %266 : vector<2x32xf32>
    %268 = arith.mulf %259, %239 : vector<2x32xf32>
    %269 = arith.mulf %253, %261 : vector<2x32xf32>
    %270 = arith.addf %268, %269 : vector<2x32xf32>
    %271 = math.tanh %270 : vector<2x32xf32>
    %272 = arith.mulf %267, %271 : vector<2x32xf32>
    %273 = vector.extract_strided_slice %82 {offsets = [0, 6, 0], sizes = [2, 1, 32], strides = [1, 1, 1]} : vector<2x14x32xf32> to vector<2x1x32xf32>
    %274 = vector.shape_cast %273 : vector<2x1x32xf32> to vector<2x32xf32>
    %275 = tpu.concatenate %274, %272 in 1 : vector<2x32xf32>, vector<2x32xf32> -> vector<2x64xf32>
    %cst_54 = arith.constant dense<0.000000e+00> : vector<2x128xf32>
    %276 = tpu.matmul %275, %83, %cst_54 {dimension_numbers = #tpu.dot_dimension_numbers<[1], [0], [0], [1], [0, 0, 1, 1], [], []>} : vector<2x64xf32>, vector<64x128xf32>, vector<2x128xf32> -> vector<2x128xf32>
    %277 = vector.broadcast %84 : vector<1x128xf32> to vector<2x128xf32>
    %278 = arith.addf %276, %277 : vector<2x128xf32>
    %279 = vector.extract_strided_slice %278 {offsets = [0, 0], sizes = [2, 32], strides = [1, 1]} : vector<2x128xf32> to vector<2x32xf32>
    %280 = arith.negf %279 : vector<2x32xf32>
    %281 = math.exp %280 : vector<2x32xf32>
    %cst_55 = arith.constant 1.000000e+00 : f32
    %282 = vector.broadcast %cst_55 : f32 to vector<2x32xf32>
    %283 = arith.addf %282, %281 : vector<2x32xf32>
    %284 = arith.divf %282, %283 : vector<2x32xf32>
    %285 = vector.extract_strided_slice %278 {offsets = [0, 32], sizes = [2, 32], strides = [1, 1]} : vector<2x128xf32> to vector<2x32xf32>
    %286 = arith.negf %285 : vector<2x32xf32>
    %287 = math.exp %286 : vector<2x32xf32>
    %cst_56 = arith.constant 1.000000e+00 : f32
    %288 = vector.broadcast %cst_56 : f32 to vector<2x32xf32>
    %289 = arith.addf %288, %287 : vector<2x32xf32>
    %290 = arith.divf %288, %289 : vector<2x32xf32>
    %291 = vector.extract_strided_slice %278 {offsets = [0, 64], sizes = [2, 32], strides = [1, 1]} : vector<2x128xf32> to vector<2x32xf32>
    %292 = math.tanh %291 : vector<2x32xf32>
    %293 = vector.extract_strided_slice %278 {offsets = [0, 96], sizes = [2, 32], strides = [1, 1]} : vector<2x128xf32> to vector<2x32xf32>
    %294 = arith.negf %293 : vector<2x32xf32>
    %295 = math.exp %294 : vector<2x32xf32>
    %cst_57 = arith.constant 1.000000e+00 : f32
    %296 = vector.broadcast %cst_57 : f32 to vector<2x32xf32>
    %297 = arith.addf %296, %295 : vector<2x32xf32>
    %298 = arith.divf %296, %297 : vector<2x32xf32>
    %299 = arith.mulf %290, %270 : vector<2x32xf32>
    %300 = arith.mulf %284, %292 : vector<2x32xf32>
    %301 = arith.addf %299, %300 : vector<2x32xf32>
    %302 = math.tanh %301 : vector<2x32xf32>
    %303 = arith.mulf %298, %302 : vector<2x32xf32>
    %304 = vector.extract_strided_slice %82 {offsets = [0, 7, 0], sizes = [2, 1, 32], strides = [1, 1, 1]} : vector<2x14x32xf32> to vector<2x1x32xf32>
    %305 = vector.shape_cast %304 : vector<2x1x32xf32> to vector<2x32xf32>
    %306 = tpu.concatenate %305, %303 in 1 : vector<2x32xf32>, vector<2x32xf32> -> vector<2x64xf32>
    %cst_58 = arith.constant dense<0.000000e+00> : vector<2x128xf32>
    %307 = tpu.matmul %306, %83, %cst_58 {dimension_numbers = #tpu.dot_dimension_numbers<[1], [0], [0], [1], [0, 0, 1, 1], [], []>} : vector<2x64xf32>, vector<64x128xf32>, vector<2x128xf32> -> vector<2x128xf32>
    %308 = vector.broadcast %84 : vector<1x128xf32> to vector<2x128xf32>
    %309 = arith.addf %307, %308 : vector<2x128xf32>
    %310 = vector.extract_strided_slice %309 {offsets = [0, 0], sizes = [2, 32], strides = [1, 1]} : vector<2x128xf32> to vector<2x32xf32>
    %311 = arith.negf %310 : vector<2x32xf32>
    %312 = math.exp %311 : vector<2x32xf32>
    %cst_59 = arith.constant 1.000000e+00 : f32
    %313 = vector.broadcast %cst_59 : f32 to vector<2x32xf32>
    %314 = arith.addf %313, %312 : vector<2x32xf32>
    %315 = arith.divf %313, %314 : vector<2x32xf32>
    %316 = vector.extract_strided_slice %309 {offsets = [0, 32], sizes = [2, 32], strides = [1, 1]} : vector<2x128xf32> to vector<2x32xf32>
    %317 = arith.negf %316 : vector<2x32xf32>
    %318 = math.exp %317 : vector<2x32xf32>
    %cst_60 = arith.constant 1.000000e+00 : f32
    %319 = vector.broadcast %cst_60 : f32 to vector<2x32xf32>
    %320 = arith.addf %319, %318 : vector<2x32xf32>
    %321 = arith.divf %319, %320 : vector<2x32xf32>
    %322 = vector.extract_strided_slice %309 {offsets = [0, 64], sizes = [2, 32], strides = [1, 1]} : vector<2x128xf32> to vector<2x32xf32>
    %323 = math.tanh %322 : vector<2x32xf32>
    %324 = vector.extract_strided_slice %309 {offsets = [0, 96], sizes = [2, 32], strides = [1, 1]} : vector<2x128xf32> to vector<2x32xf32>
    %325 = arith.negf %324 : vector<2x32xf32>
    %326 = math.exp %325 : vector<2x32xf32>
    %cst_61 = arith.constant 1.000000e+00 : f32
    %327 = vector.broadcast %cst_61 : f32 to vector<2x32xf32>
    %328 = arith.addf %327, %326 : vector<2x32xf32>
    %329 = arith.divf %327, %328 : vector<2x32xf32>
    %330 = arith.mulf %321, %301 : vector<2x32xf32>
    %331 = arith.mulf %315, %323 : vector<2x32xf32>
    %332 = arith.addf %330, %331 : vector<2x32xf32>
    %333 = math.tanh %332 : vector<2x32xf32>
    %334 = arith.mulf %329, %333 : vector<2x32xf32>
    %335 = vector.extract_strided_slice %82 {offsets = [0, 8, 0], sizes = [2, 1, 32], strides = [1, 1, 1]} : vector<2x14x32xf32> to vector<2x1x32xf32>
    %336 = vector.shape_cast %335 : vector<2x1x32xf32> to vector<2x32xf32>
    %337 = tpu.concatenate %336, %334 in 1 : vector<2x32xf32>, vector<2x32xf32> -> vector<2x64xf32>
    %cst_62 = arith.constant dense<0.000000e+00> : vector<2x128xf32>
    %338 = tpu.matmul %337, %83, %cst_62 {dimension_numbers = #tpu.dot_dimension_numbers<[1], [0], [0], [1], [0, 0, 1, 1], [], []>} : vector<2x64xf32>, vector<64x128xf32>, vector<2x128xf32> -> vector<2x128xf32>
    %339 = vector.broadcast %84 : vector<1x128xf32> to vector<2x128xf32>
    %340 = arith.addf %338, %339 : vector<2x128xf32>
    %341 = vector.extract_strided_slice %340 {offsets = [0, 0], sizes = [2, 32], strides = [1, 1]} : vector<2x128xf32> to vector<2x32xf32>
    %342 = arith.negf %341 : vector<2x32xf32>
    %343 = math.exp %342 : vector<2x32xf32>
    %cst_63 = arith.constant 1.000000e+00 : f32
    %344 = vector.broadcast %cst_63 : f32 to vector<2x32xf32>
    %345 = arith.addf %344, %343 : vector<2x32xf32>
    %346 = arith.divf %344, %345 : vector<2x32xf32>
    %347 = vector.extract_strided_slice %340 {offsets = [0, 32], sizes = [2, 32], strides = [1, 1]} : vector<2x128xf32> to vector<2x32xf32>
    %348 = arith.negf %347 : vector<2x32xf32>
    %349 = math.exp %348 : vector<2x32xf32>
    %cst_64 = arith.constant 1.000000e+00 : f32
    %350 = vector.broadcast %cst_64 : f32 to vector<2x32xf32>
    %351 = arith.addf %350, %349 : vector<2x32xf32>
    %352 = arith.divf %350, %351 : vector<2x32xf32>
    %353 = vector.extract_strided_slice %340 {offsets = [0, 64], sizes = [2, 32], strides = [1, 1]} : vector<2x128xf32> to vector<2x32xf32>
    %354 = math.tanh %353 : vector<2x32xf32>
    %355 = vector.extract_strided_slice %340 {offsets = [0, 96], sizes = [2, 32], strides = [1, 1]} : vector<2x128xf32> to vector<2x32xf32>
    %356 = arith.negf %355 : vector<2x32xf32>
    %357 = math.exp %356 : vector<2x32xf32>
    %cst_65 = arith.constant 1.000000e+00 : f32
    %358 = vector.broadcast %cst_65 : f32 to vector<2x32xf32>
    %359 = arith.addf %358, %357 : vector<2x32xf32>
    %360 = arith.divf %358, %359 : vector<2x32xf32>
    %361 = arith.mulf %352, %332 : vector<2x32xf32>
    %362 = arith.mulf %346, %354 : vector<2x32xf32>
    %363 = arith.addf %361, %362 : vector<2x32xf32>
    %364 = math.tanh %363 : vector<2x32xf32>
    %365 = arith.mulf %360, %364 : vector<2x32xf32>
    %366 = vector.extract_strided_slice %82 {offsets = [0, 9, 0], sizes = [2, 1, 32], strides = [1, 1, 1]} : vector<2x14x32xf32> to vector<2x1x32xf32>
    %367 = vector.shape_cast %366 : vector<2x1x32xf32> to vector<2x32xf32>
    %368 = tpu.concatenate %367, %365 in 1 : vector<2x32xf32>, vector<2x32xf32> -> vector<2x64xf32>
    %cst_66 = arith.constant dense<0.000000e+00> : vector<2x128xf32>
    %369 = tpu.matmul %368, %83, %cst_66 {dimension_numbers = #tpu.dot_dimension_numbers<[1], [0], [0], [1], [0, 0, 1, 1], [], []>} : vector<2x64xf32>, vector<64x128xf32>, vector<2x128xf32> -> vector<2x128xf32>
    %370 = vector.broadcast %84 : vector<1x128xf32> to vector<2x128xf32>
    %371 = arith.addf %369, %370 : vector<2x128xf32>
    %372 = vector.extract_strided_slice %371 {offsets = [0, 0], sizes = [2, 32], strides = [1, 1]} : vector<2x128xf32> to vector<2x32xf32>
    %373 = arith.negf %372 : vector<2x32xf32>
    %374 = math.exp %373 : vector<2x32xf32>
    %cst_67 = arith.constant 1.000000e+00 : f32
    %375 = vector.broadcast %cst_67 : f32 to vector<2x32xf32>
    %376 = arith.addf %375, %374 : vector<2x32xf32>
    %377 = arith.divf %375, %376 : vector<2x32xf32>
    %378 = vector.extract_strided_slice %371 {offsets = [0, 32], sizes = [2, 32], strides = [1, 1]} : vector<2x128xf32> to vector<2x32xf32>
    %379 = arith.negf %378 : vector<2x32xf32>
    %380 = math.exp %379 : vector<2x32xf32>
    %cst_68 = arith.constant 1.000000e+00 : f32
    %381 = vector.broadcast %cst_68 : f32 to vector<2x32xf32>
    %382 = arith.addf %381, %380 : vector<2x32xf32>
    %383 = arith.divf %381, %382 : vector<2x32xf32>
    %384 = vector.extract_strided_slice %371 {offsets = [0, 64], sizes = [2, 32], strides = [1, 1]} : vector<2x128xf32> to vector<2x32xf32>
    %385 = math.tanh %384 : vector<2x32xf32>
    %386 = vector.extract_strided_slice %371 {offsets = [0, 96], sizes = [2, 32], strides = [1, 1]} : vector<2x128xf32> to vector<2x32xf32>
    %387 = arith.negf %386 : vector<2x32xf32>
    %388 = math.exp %387 : vector<2x32xf32>
    %cst_69 = arith.constant 1.000000e+00 : f32
    %389 = vector.broadcast %cst_69 : f32 to vector<2x32xf32>
    %390 = arith.addf %389, %388 : vector<2x32xf32>
    %391 = arith.divf %389, %390 : vector<2x32xf32>
    %392 = arith.mulf %383, %363 : vector<2x32xf32>
    %393 = arith.mulf %377, %385 : vector<2x32xf32>
    %394 = arith.addf %392, %393 : vector<2x32xf32>
    %395 = math.tanh %394 : vector<2x32xf32>
    %396 = arith.mulf %391, %395 : vector<2x32xf32>
    %397 = vector.extract_strided_slice %82 {offsets = [0, 10, 0], sizes = [2, 1, 32], strides = [1, 1, 1]} : vector<2x14x32xf32> to vector<2x1x32xf32>
    %398 = vector.shape_cast %397 : vector<2x1x32xf32> to vector<2x32xf32>
    %399 = tpu.concatenate %398, %396 in 1 : vector<2x32xf32>, vector<2x32xf32> -> vector<2x64xf32>
    %cst_70 = arith.constant dense<0.000000e+00> : vector<2x128xf32>
    %400 = tpu.matmul %399, %83, %cst_70 {dimension_numbers = #tpu.dot_dimension_numbers<[1], [0], [0], [1], [0, 0, 1, 1], [], []>} : vector<2x64xf32>, vector<64x128xf32>, vector<2x128xf32> -> vector<2x128xf32>
    %401 = vector.broadcast %84 : vector<1x128xf32> to vector<2x128xf32>
    %402 = arith.addf %400, %401 : vector<2x128xf32>
    %403 = vector.extract_strided_slice %402 {offsets = [0, 0], sizes = [2, 32], strides = [1, 1]} : vector<2x128xf32> to vector<2x32xf32>
    %404 = arith.negf %403 : vector<2x32xf32>
    %405 = math.exp %404 : vector<2x32xf32>
    %cst_71 = arith.constant 1.000000e+00 : f32
    %406 = vector.broadcast %cst_71 : f32 to vector<2x32xf32>
    %407 = arith.addf %406, %405 : vector<2x32xf32>
    %408 = arith.divf %406, %407 : vector<2x32xf32>
    %409 = vector.extract_strided_slice %402 {offsets = [0, 32], sizes = [2, 32], strides = [1, 1]} : vector<2x128xf32> to vector<2x32xf32>
    %410 = arith.negf %409 : vector<2x32xf32>
    %411 = math.exp %410 : vector<2x32xf32>
    %cst_72 = arith.constant 1.000000e+00 : f32
    %412 = vector.broadcast %cst_72 : f32 to vector<2x32xf32>
    %413 = arith.addf %412, %411 : vector<2x32xf32>
    %414 = arith.divf %412, %413 : vector<2x32xf32>
    %415 = vector.extract_strided_slice %402 {offsets = [0, 64], sizes = [2, 32], strides = [1, 1]} : vector<2x128xf32> to vector<2x32xf32>
    %416 = math.tanh %415 : vector<2x32xf32>
    %417 = vector.extract_strided_slice %402 {offsets = [0, 96], sizes = [2, 32], strides = [1, 1]} : vector<2x128xf32> to vector<2x32xf32>
    %418 = arith.negf %417 : vector<2x32xf32>
    %419 = math.exp %418 : vector<2x32xf32>
    %cst_73 = arith.constant 1.000000e+00 : f32
    %420 = vector.broadcast %cst_73 : f32 to vector<2x32xf32>
    %421 = arith.addf %420, %419 : vector<2x32xf32>
    %422 = arith.divf %420, %421 : vector<2x32xf32>
    %423 = arith.mulf %414, %394 : vector<2x32xf32>
    %424 = arith.mulf %408, %416 : vector<2x32xf32>
    %425 = arith.addf %423, %424 : vector<2x32xf32>
    %426 = math.tanh %425 : vector<2x32xf32>
    %427 = arith.mulf %422, %426 : vector<2x32xf32>
    %428 = vector.extract_strided_slice %82 {offsets = [0, 11, 0], sizes = [2, 1, 32], strides = [1, 1, 1]} : vector<2x14x32xf32> to vector<2x1x32xf32>
    %429 = vector.shape_cast %428 : vector<2x1x32xf32> to vector<2x32xf32>
    %430 = tpu.concatenate %429, %427 in 1 : vector<2x32xf32>, vector<2x32xf32> -> vector<2x64xf32>
    %cst_74 = arith.constant dense<0.000000e+00> : vector<2x128xf32>
    %431 = tpu.matmul %430, %83, %cst_74 {dimension_numbers = #tpu.dot_dimension_numbers<[1], [0], [0], [1], [0, 0, 1, 1], [], []>} : vector<2x64xf32>, vector<64x128xf32>, vector<2x128xf32> -> vector<2x128xf32>
    %432 = vector.broadcast %84 : vector<1x128xf32> to vector<2x128xf32>
    %433 = arith.addf %431, %432 : vector<2x128xf32>
    %434 = vector.extract_strided_slice %433 {offsets = [0, 0], sizes = [2, 32], strides = [1, 1]} : vector<2x128xf32> to vector<2x32xf32>
    %435 = arith.negf %434 : vector<2x32xf32>
    %436 = math.exp %435 : vector<2x32xf32>
    %cst_75 = arith.constant 1.000000e+00 : f32
    %437 = vector.broadcast %cst_75 : f32 to vector<2x32xf32>
    %438 = arith.addf %437, %436 : vector<2x32xf32>
    %439 = arith.divf %437, %438 : vector<2x32xf32>
    %440 = vector.extract_strided_slice %433 {offsets = [0, 32], sizes = [2, 32], strides = [1, 1]} : vector<2x128xf32> to vector<2x32xf32>
    %441 = arith.negf %440 : vector<2x32xf32>
    %442 = math.exp %441 : vector<2x32xf32>
    %cst_76 = arith.constant 1.000000e+00 : f32
    %443 = vector.broadcast %cst_76 : f32 to vector<2x32xf32>
    %444 = arith.addf %443, %442 : vector<2x32xf32>
    %445 = arith.divf %443, %444 : vector<2x32xf32>
    %446 = vector.extract_strided_slice %433 {offsets = [0, 64], sizes = [2, 32], strides = [1, 1]} : vector<2x128xf32> to vector<2x32xf32>
    %447 = math.tanh %446 : vector<2x32xf32>
    %448 = vector.extract_strided_slice %433 {offsets = [0, 96], sizes = [2, 32], strides = [1, 1]} : vector<2x128xf32> to vector<2x32xf32>
    %449 = arith.negf %448 : vector<2x32xf32>
    %450 = math.exp %449 : vector<2x32xf32>
    %cst_77 = arith.constant 1.000000e+00 : f32
    %451 = vector.broadcast %cst_77 : f32 to vector<2x32xf32>
    %452 = arith.addf %451, %450 : vector<2x32xf32>
    %453 = arith.divf %451, %452 : vector<2x32xf32>
    %454 = arith.mulf %445, %425 : vector<2x32xf32>
    %455 = arith.mulf %439, %447 : vector<2x32xf32>
    %456 = arith.addf %454, %455 : vector<2x32xf32>
    %457 = math.tanh %456 : vector<2x32xf32>
    %458 = arith.mulf %453, %457 : vector<2x32xf32>
    %459 = vector.extract_strided_slice %82 {offsets = [0, 12, 0], sizes = [2, 1, 32], strides = [1, 1, 1]} : vector<2x14x32xf32> to vector<2x1x32xf32>
    %460 = vector.shape_cast %459 : vector<2x1x32xf32> to vector<2x32xf32>
    %461 = tpu.concatenate %460, %458 in 1 : vector<2x32xf32>, vector<2x32xf32> -> vector<2x64xf32>
    %cst_78 = arith.constant dense<0.000000e+00> : vector<2x128xf32>
    %462 = tpu.matmul %461, %83, %cst_78 {dimension_numbers = #tpu.dot_dimension_numbers<[1], [0], [0], [1], [0, 0, 1, 1], [], []>} : vector<2x64xf32>, vector<64x128xf32>, vector<2x128xf32> -> vector<2x128xf32>
    %463 = vector.broadcast %84 : vector<1x128xf32> to vector<2x128xf32>
    %464 = arith.addf %462, %463 : vector<2x128xf32>
    %465 = vector.extract_strided_slice %464 {offsets = [0, 0], sizes = [2, 32], strides = [1, 1]} : vector<2x128xf32> to vector<2x32xf32>
    %466 = arith.negf %465 : vector<2x32xf32>
    %467 = math.exp %466 : vector<2x32xf32>
    %cst_79 = arith.constant 1.000000e+00 : f32
    %468 = vector.broadcast %cst_79 : f32 to vector<2x32xf32>
    %469 = arith.addf %468, %467 : vector<2x32xf32>
    %470 = arith.divf %468, %469 : vector<2x32xf32>
    %471 = vector.extract_strided_slice %464 {offsets = [0, 32], sizes = [2, 32], strides = [1, 1]} : vector<2x128xf32> to vector<2x32xf32>
    %472 = arith.negf %471 : vector<2x32xf32>
    %473 = math.exp %472 : vector<2x32xf32>
    %cst_80 = arith.constant 1.000000e+00 : f32
    %474 = vector.broadcast %cst_80 : f32 to vector<2x32xf32>
    %475 = arith.addf %474, %473 : vector<2x32xf32>
    %476 = arith.divf %474, %475 : vector<2x32xf32>
    %477 = vector.extract_strided_slice %464 {offsets = [0, 64], sizes = [2, 32], strides = [1, 1]} : vector<2x128xf32> to vector<2x32xf32>
    %478 = math.tanh %477 : vector<2x32xf32>
    %479 = vector.extract_strided_slice %464 {offsets = [0, 96], sizes = [2, 32], strides = [1, 1]} : vector<2x128xf32> to vector<2x32xf32>
    %480 = arith.negf %479 : vector<2x32xf32>
    %481 = math.exp %480 : vector<2x32xf32>
    %cst_81 = arith.constant 1.000000e+00 : f32
    %482 = vector.broadcast %cst_81 : f32 to vector<2x32xf32>
    %483 = arith.addf %482, %481 : vector<2x32xf32>
    %484 = arith.divf %482, %483 : vector<2x32xf32>
    %485 = arith.mulf %476, %456 : vector<2x32xf32>
    %486 = arith.mulf %470, %478 : vector<2x32xf32>
    %487 = arith.addf %485, %486 : vector<2x32xf32>
    %488 = math.tanh %487 : vector<2x32xf32>
    %489 = arith.mulf %484, %488 : vector<2x32xf32>
    %490 = vector.extract_strided_slice %82 {offsets = [0, 13, 0], sizes = [2, 1, 32], strides = [1, 1, 1]} : vector<2x14x32xf32> to vector<2x1x32xf32>
    %491 = vector.shape_cast %490 : vector<2x1x32xf32> to vector<2x32xf32>
    %492 = tpu.concatenate %491, %489 in 1 : vector<2x32xf32>, vector<2x32xf32> -> vector<2x64xf32>
    %cst_82 = arith.constant dense<0.000000e+00> : vector<2x128xf32>
    %493 = tpu.matmul %492, %83, %cst_82 {dimension_numbers = #tpu.dot_dimension_numbers<[1], [0], [0], [1], [0, 0, 1, 1], [], []>} : vector<2x64xf32>, vector<64x128xf32>, vector<2x128xf32> -> vector<2x128xf32>
    %494 = vector.broadcast %84 : vector<1x128xf32> to vector<2x128xf32>
    %495 = arith.addf %493, %494 : vector<2x128xf32>
    %496 = vector.extract_strided_slice %495 {offsets = [0, 0], sizes = [2, 32], strides = [1, 1]} : vector<2x128xf32> to vector<2x32xf32>
    %497 = arith.negf %496 : vector<2x32xf32>
    %498 = math.exp %497 : vector<2x32xf32>
    %cst_83 = arith.constant 1.000000e+00 : f32
    %499 = vector.broadcast %cst_83 : f32 to vector<2x32xf32>
    %500 = arith.addf %499, %498 : vector<2x32xf32>
    %501 = arith.divf %499, %500 : vector<2x32xf32>
    %502 = vector.extract_strided_slice %495 {offsets = [0, 32], sizes = [2, 32], strides = [1, 1]} : vector<2x128xf32> to vector<2x32xf32>
    %503 = arith.negf %502 : vector<2x32xf32>
    %504 = math.exp %503 : vector<2x32xf32>
    %cst_84 = arith.constant 1.000000e+00 : f32
    %505 = vector.broadcast %cst_84 : f32 to vector<2x32xf32>
    %506 = arith.addf %505, %504 : vector<2x32xf32>
    %507 = arith.divf %505, %506 : vector<2x32xf32>
    %508 = vector.extract_strided_slice %495 {offsets = [0, 64], sizes = [2, 32], strides = [1, 1]} : vector<2x128xf32> to vector<2x32xf32>
    %509 = math.tanh %508 : vector<2x32xf32>
    %510 = vector.extract_strided_slice %495 {offsets = [0, 96], sizes = [2, 32], strides = [1, 1]} : vector<2x128xf32> to vector<2x32xf32>
    %511 = arith.negf %510 : vector<2x32xf32>
    %512 = math.exp %511 : vector<2x32xf32>
    %cst_85 = arith.constant 1.000000e+00 : f32
    %513 = vector.broadcast %cst_85 : f32 to vector<2x32xf32>
    %514 = arith.addf %513, %512 : vector<2x32xf32>
    %515 = arith.divf %513, %514 : vector<2x32xf32>
    %516 = arith.mulf %507, %487 : vector<2x32xf32>
    %517 = arith.mulf %501, %509 : vector<2x32xf32>
    %518 = arith.addf %516, %517 : vector<2x32xf32>
    %519 = math.tanh %518 : vector<2x32xf32>
    %520 = arith.mulf %515, %519 : vector<2x32xf32>
    %c0_86 = arith.constant 0 : index
    %c0_87 = arith.constant 0 : index
    %521 = vector.load %arg9[%c0_86, %c0_87] : memref<2x32xf32, #tpu.memory_space<vmem>>, vector<2x32xf32>
    tpu.vector_store %arg9[%c0_86, %c0_87], %520 {strides = array<i32>} : memref<2x32xf32, #tpu.memory_space<vmem>>, vector<2x32xf32>,
    return
  }
  func.func @transform_0(%arg0: i32) -> (i32, i32, i32) {
    %c0_i32 = arith.constant 0 : i32
    %c0_i32_0 = arith.constant 0 : i32
    %c0_i32_1 = arith.constant 0 : i32
    return %arg0, %c0_i32, %c0_i32_0 : i32, i32, i32
  }
  func.func @transform_1(%arg0: i32) -> (i32, i32) {
    %c0_i32 = arith.constant 0 : i32
    %c0_i32_0 = arith.constant 0 : i32
    %c0_i32_1 = arith.constant 0 : i32
    return %c0_i32, %c0_i32_0 : i32, i32
  }
  func.func @transform_2(%arg0: i32) -> (i32, i32) {
    %c0_i32 = arith.constant 0 : i32
    %c0_i32_0 = arith.constant 0 : i32
    %c0_i32_1 = arith.constant 0 : i32
    return %c0_i32, %c0_i32_0 : i32, i32
  }
  func.func @transform_3(%arg0: i32) -> (i32, i32) {
    %c0_i32 = arith.constant 0 : i32
    %c0_i32_0 = arith.constant 0 : i32
    %c0_i32_1 = arith.constant 0 : i32
    return %c0_i32, %c0_i32_0 : i32, i32
  }
  func.func @transform_4(%arg0: i32) -> (i32, i32) {
    %c0_i32 = arith.constant 0 : i32
    %c0_i32_0 = arith.constant 0 : i32
    %c0_i32_1 = arith.constant 0 : i32
    return %c0_i32, %c0_i32_0 : i32, i32
  }
  func.func @transform_5(%arg0: i32) -> (i32, i32) {
    %c0_i32 = arith.constant 0 : i32
    %c0_i32_0 = arith.constant 0 : i32
    %c0_i32_1 = arith.constant 0 : i32
    return %c0_i32, %c0_i32_0 : i32, i32
  }
  func.func @transform_6(%arg0: i32) -> (i32, i32) {
    %c0_i32 = arith.constant 0 : i32
    %c0_i32_0 = arith.constant 0 : i32
    %c0_i32_1 = arith.constant 0 : i32
    return %c0_i32, %c0_i32_0 : i32, i32
  }
  func.func @transform_7(%arg0: i32) -> (i32, i32) {
    %c0_i32 = arith.constant 0 : i32
    %c0_i32_0 = arith.constant 0 : i32
    %c0_i32_1 = arith.constant 0 : i32
    return %c0_i32, %c0_i32_0 : i32, i32
  }
  func.func @transform_8(%arg0: i32) -> (i32, i32) {
    %c0_i32 = arith.constant 0 : i32
    %c0_i32_0 = arith.constant 0 : i32
    return %arg0, %c0_i32 : i32, i32
  }
}

</mosaic_0001>

<bundles_post_ra>
// kernel: tpu_custom_call.1
= control target key start
LH: loop header
LB: loop body
LE: loop exit
PB: predicated region body
PF: predicated region fallthrough
CT: control target
= control target key end

     0   :  { %v2822_v2 = vmov 0   ;;  %s3481_s0 = inlined_call_operand.vmem [shape: f32[2,16,2], index: 0, kind: input, shape index: {}]   ;;  %s3482_s1 = inlined_call_operand.vmem [shape: f32[6,32], index: 1, kind: input, shape index: {}]   ;;  %s3483_s2 = inlined_call_operand.vmem [shape: f32[1,32], index: 2, kind: input, shape index: {}]   ;;  %s3484_s3 = inlined_call_operand.vmem [shape: f32[1,32], index: 3, kind: input, shape index: {}]   ;;  %s3485_s4 = inlined_call_operand.vmem [shape: f32[32,4], index: 4, kind: input, shape index: {}]   ;;  %s3486_s5 = inlined_call_operand.vmem [shape: f32[4,32], index: 5, kind: input, shape index: {}]   ;;  %s3487_s6 = inlined_call_operand.vmem [shape: f32[64,128], index: 6, kind: input, shape index: {}]   ;;  %s3488_s7 = inlined_call_operand.vmem [shape: f32[1,128], index: 7, kind: input, shape index: {}]   ;;  %s3489_s8 = inlined_call_operand.hbm [shape: f32[2,32], index: 8, kind: output, shape index: {}]  }
   0x1   :  { %v32_v0 = vld [vmem:[%s3481_s0 + $0x10] sm:$0xff]  ;;  %v30_v1 = vld [vmem:[%s3481_s0] sm:$0xff]  ;;  %2674 = vset.pattern.permute.xlu1 %v2822_v2  ;;  %2673 = vset.pattern.permute.xlu0 %v2822_v2 }
   0x2   :  { %13 = vsyncpa [#allocation3], 0  ;;  %47 = vperm.xlu1 %2674, %v32_v0   ;;  %37 = vperm.xlu0 %2673, %v30_v1   ;;  %v33_v3 = vld [vmem:[%s3481_s0 + $0x18] sm:$0xff]  ;;  %v31_v4 = vld [vmem:[%s3481_s0 + $0x8] sm:$0xff]  ;;  %v2823_v5 = vmov 1   ;;  %v2824_v7 = vmov 0.0   ;;  %v55_v11 = vlaneseq }
   0x3   :  { %v204_v6 = vld [vmem:[%s3485_s4 + $0x18] sm:$0xff]  ;;  %2367 = vmatprep.subr.mxu0 %v2824_v7  ;;  %2378 = vmatprep.subr.mxu1 %v2824_v7  ;;  %v203_v8 = vld [vmem:[%s3485_s4 + $0x10] sm:$0xff]  ;;  %v202_v9 = vld [vmem:[%s3485_s4 + $0x8] sm:$0xff]  ;;  %vm2825_vm0 = vmmov 0   ;;  %vm160_vm1 = vcmask 1045504   ;;  %vm107_vm2 = vcmask 1046528  }
   0x4   :  { %2368 = vmatpush3.msra.mxu0 %v204_v6  ;;  %2379 = vmatpush3.msra.mxu1 %v204_v6  ;;  %v201_v10 = vld [vmem:[%s3485_s4] sm:$0xff]  ;;  %v2913_v12 = vshrl.u32 %v55_v11, 7  ;;  %vm208_vm3 = vcmask 259072   ;;  %vm206_vm4 = vcmask 261120   ;;  %vm250_vm5 = vcmask 1041409   ;;  %s2827_s18 = smov 64  }
   0x5   :  { %2369 = vmatprep.subr.mxu0 %v2824_v7  ;;  %2380 = vmatprep.subr.mxu1 %v2824_v7  ;;  %v34_v14 = vld [vmem:[%s3482_s1] sm:$0x3f]  ;;  %vm411_vm6 = vcmask 1043456   ;;  %vm407_vm7 = vcmask 31744   ;;  %vm780_vm12 = vcmask 1042434   ;;  %vm682_vm13 = vcmask 523264  }
   0x6   :  { %52 = vperm.xlu1 %2674, %v33_v3   ;;  %42 = vperm.xlu0 %2673, %v31_v4   ;;  %v97_v13 = vsub.s32 2, %v2913_v12  ;;  %v150_v15 = vsub.s32 4, %v2913_v12  ;;  %v2921_v16 = vsub.s32 0, %v2913_v12  ;;  %v85_v21 = vsub.s32 1, %v2913_v12  ;;  %s2828_s19 = smov 32  }
   0x7   :  { %2370 = vmatpush3.msra.mxu0 %v203_v8  ;;  %2381 = vmatpush3.msra.mxu1 %v203_v8  ;;  %v124_v22 = vsub.s32 3, %v2913_v12  ;;  %v177_v23 = vsub.s32 5, %v2913_v12  ;;  %vm887_vm14 = vcmask 1043459   ;;  %vm994_vm15 = vcmask 1044484  }
   0x8   :  { %2371 = vmatprep.subr.mxu0 %v2824_v7  ;;  %2382 = vmatprep.subr.mxu1 %v2824_v7  ;;  %v98_v17 = vrot.slane %v34_v14, %v97_v13  ;;  %v151_v20 = vrot.slane %v34_v14, %v150_v15  ;;  %v58_v24 = vrot.slane %v34_v14, %v2921_v16 }
   0x9   :  { %2372 = vmatpush3.msra.mxu0 %v202_v9  ;;  %2375 = vmatprep.mubr.msk.f32.mxu0 %vm2825_vm0, %v2824_v7  ;;  %v86_v32 = vrot.slane %v34_v14, %v85_v21  ;;  %v125_v33 = vrot.slane %v34_v14, %v124_v22  ;;  %v178_v34 = vrot.slane %v34_v14, %v177_v23 }
   0xa   :  { %2676 = vset.pattern.permute.xlu1 %v2823_v5  ;;  %2675 = vset.pattern.permute.xlu0 %v2823_v5 }
   0xb   :  { %72 = vperm.xlu1 %2676, %v31_v4   ;;  %68 = vperm.xlu0 %2675, %v30_v1  }
   0xc   :  { %2373 = vmatprep.subr.mxu0 %v2824_v7  ;;  %2383 = vmatpush3.msra.mxu1 %v202_v9 }
   0xd   :  { %2374 = vmatpush3.msra.mxu0 %v201_v10  ;;  %2384 = vmatprep.subr.mxu1 %v2824_v7 }
   0xe   :  { %2385 = vmatpush3.msra.mxu1 %v201_v10  ;;  %2386 = vmatprep.mubr.msk.f32.mxu1 %vm2825_vm0, %v2824_v7 }
   0xf   :  { %76 = vperm.xlu1 %2676, %v32_v0   ;;  %80 = vperm.xlu0 %2675, %v33_v3  }
  0x10   :  { %2389 = vmatprep.subr.mxu0 %v2824_v7  ;;  %2394 = vmatprep.subr.mxu1 %v2824_v7 }
  0x7d   :  { %v48_v18 = vpop.permute.xlu1 %47  ;;  %v38_v19 = vpop.permute.xlu0 %37 }
  0x7e   :  { %v101_v25 = vmul.f32 %v98_v17, %v48_v18  ;;  %v99_v28 = vmul.f32 %v98_v17, %v38_v19  ;;  %v152_v29 = vmul.f32 %v151_v20, %v38_v19  ;;  %v61_v35 = vmul.f32 %v58_v24, %v48_v18 }
  0x7f   :  { %v2927_v37 = vmul.f32 %v151_v20, %v48_v18  ;;  %v59_v38 = vmul.f32 %v58_v24, %v38_v19 }
  0x80   :  { %v111_v36 = vrot.slane %v101_v25, 1  ;;  %v108_v40 = vrot.slane %v99_v28, 1  ;;  %v161_v41 = vrot.slane %v152_v29, 2 }
  0x81   :  { %v53_v26 = vpop.permute.xlu1 %52  ;;  %v43_v27 = vpop.permute.xlu0 %42 }
  0x82   :  { %v102_v30 = vmul.f32 %v98_v17, %v53_v26  ;;  %v100_v31 = vmul.f32 %v98_v17, %v43_v27  ;;  %v153_v39 = vmul.f32 %v151_v20, %v43_v27  ;;  %v60_v46 = vmul.f32 %v58_v24, %v43_v27 }
  0x83   :  { %v62_v50 = vmul.f32 %v58_v24, %v53_v26  ;;  %v155_v54 = vmul.f32 %v151_v20, %v53_v26  ;;  %v164_v26 = vrot.slane %v2927_v37, 2 }
  0x84   :  { %v112_v42 = vrot.slane %v102_v30, 1  ;;  %v109_v43 = vrot.slane %v100_v31, 1  ;;  %v162_v55 = vrot.slane %v153_v39, 2 }
  0x85   :  { %v165_v22 = vrot.slane %v155_v54, 2 }
  0x86   :  { %v73_v44 = vpop.permute.xlu1 %72  ;;  %v69_v45 = vpop.permute.xlu0 %68  ;;  %v110_v58 = vsel %vm107_vm2, %v108_v40, %v109_v43  ;;  %v113_v61 = vsel %vm107_vm2, %v111_v36, %v112_v42  ;;  %v163_v19 = vsel %vm160_vm1, %v161_v41, %v162_v55 }
  0x87   :  { %v88_v47 = vmul.f32 %v86_v32, %v73_v44  ;;  %v127_v48 = vmul.f32 %v125_v33, %v73_v44  ;;  %v180_v49 = vmul.f32 %v178_v34, %v73_v44  ;;  %v87_v51 = vmul.f32 %v86_v32, %v69_v45 }
  0x88   :  { %v126_v52 = vmul.f32 %v125_v33, %v69_v45  ;;  %v179_v53 = vmul.f32 %v178_v34, %v69_v45  ;;  %v166_v37 = vsel %vm160_vm1, %v164_v26, %v165_v22 }
  0x89   :  { %v92_v56 = vadd.f32 %v88_v47, %v60_v46  ;;  %v135_v57 = vrot.slane %v127_v48, 1  ;;  %v91_v59 = vadd.f32 %v87_v51, %v59_v38  ;;  %v188_v1 = vrot.slane %v180_v49, 2 }
  0x8a   :  { %v134_v60 = vrot.slane %v126_v52, 1  ;;  %v77_v62 = vpop.permute.xlu1 %76  ;;  %v81_v63 = vpop.permute.xlu0 %80  ;;  %v187_v6 = vrot.slane %v179_v53, 2 }
  0x8b   :  { %v119_v0 = vadd.f32 %v109_v43, %v92_v56  ;;  %v89_v2 = vmul.f32 %v86_v32, %v77_v62  ;;  %v128_v3 = vmul.f32 %v125_v33, %v77_v62  ;;  %v118_v4 = vadd.f32 %v110_v58, %v91_v59 }
  0x8c   :  { %v136_v5 = vsel %vm107_vm2, %v134_v60, %v135_v57  ;;  %v90_v8 = vmul.f32 %v86_v32, %v81_v63  ;;  %v181_v13 = vmul.f32 %v178_v34, %v77_v62  ;;  %v129_v17 = vmul.f32 %v125_v33, %v81_v63 }
  0x8d   :  { %v145_v9 = vadd.f32 %v135_v57, %v119_v0  ;;  %v93_v10 = vadd.f32 %v89_v2, %v61_v35  ;;  %v137_v11 = vrot.slane %v128_v3, 1  ;;  %v144_v14 = vadd.f32 %v136_v5, %v118_v4 }
  0x8e   :  { %v94_v15 = vadd.f32 %v90_v8, %v62_v50  ;;  %v182_v18 = vmul.f32 %v178_v34, %v81_v63  ;;  %v138_v25 = vrot.slane %v129_v17, 1  ;;  %v189_v28 = vsel %vm160_vm1, %v187_v6, %v188_v1 }
  0x8f   :  { %v172_v20 = vadd.f32 %v162_v55, %v145_v9  ;;  %v120_v21 = vadd.f32 %v113_v61, %v93_v10  ;;  %v171_v23 = vadd.f32 %v163_v19, %v144_v14  ;;  %v190_v29 = vrot.slane %v181_v13, 2 }
  0x90   :  { %v121_v24 = vadd.f32 %v112_v42, %v94_v15  ;;  %v139_v31 = vsel %vm107_vm2, %v137_v11, %v138_v25  ;;  %v191_v33 = vrot.slane %v182_v18, 2  ;;  %vm1208_vm2 = vcmask 1046534  }
  0x91   :  { %v2934_v27 = vadd.f32 %v188_v1, %v172_v20  ;;  %v2937_v30 = vadd.f32 %v189_v28, %v171_v23  ;;  %v146_v36 = vadd.f32 %v139_v31, %v120_v21 }
  0x92   :  { %v147_v32 = vadd.f32 %v138_v25, %v121_v24  ;;  %v192_v44 = vsel %vm160_vm1, %v190_v29, %v191_v33  ;;  %vm1101_vm1 = vcmask 1045509  }
  0x93   :  { %v209_v34 = vsel %vm208_vm3, %v2934_v27, 0.0  ;;  %v227_v35 = vmul.f32 %v2934_v27, %v2934_v27  ;;  %v207_v38 = vsel %vm206_vm4, %v2937_v30, 0.0  ;;  %v226_v39 = vmul.f32 %v2937_v30, %v2937_v30 }
  0x94   :  { %v174_v40 = vadd.f32 %v165_v22, %v147_v32  ;;  %v173_v42 = vadd.f32 %v166_v37, %v146_v36  ;;  %v210_v43 = vadd.f32 %v209_v34, %v207_v38  ;;  %v205_v22 = vld [vmem:[%s3486_s5] sm:$0xf]  ;;  %v2986_v36 = vld [vmem:[%s3487_s6 + $0x38] sm:$0xff]  ;;  %v2994_v37 = vld [vmem:[%s3487_s6 + $0x30] sm:$0xff] }
  0x95   :  { %v231_v41 = vsel %vm208_vm3, %v227_v35, 0.0  ;;  %v230_v46 = vsel %vm206_vm4, %v226_v39, 0.0  ;;  %v3003_v38 = vld [vmem:[%s3487_s6 + $0x28] sm:$0xff]  ;;  %v3012_v39 = vld [vmem:[%s3487_s6 + $0x20] sm:$0xff] }
  0x96   :  { %v2951_v45 = vadd.f32 %v191_v33, %v174_v40  ;;  %v2954_v47 = vadd.f32 %v192_v44, %v173_v42  ;;  %v211_v48 = vrot.slane %v210_v43, 4  ;;  %v232_v49 = vadd.f32 %v231_v41, %v230_v46  ;;  %v3021_v40 = vld [vmem:[%s3487_s6 + $0x18] sm:$0xff]  ;;  %v3030_v41 = vld [vmem:[%s3487_s6 + $0x10] sm:$0xff]  ;;  %v3037_v42 = vld [vmem:[%s3487_s6 + $0x8] sm:$0xff] }
  0x98   :  { %v218_v50 = vsel %vm208_vm3, %v2951_v45, 0.0  ;;  %v229_v51 = vmul.f32 %v2951_v45, %v2951_v45  ;;  %v217_v52 = vsel %vm206_vm4, %v2954_v47, 0.0  ;;  %v228_v53 = vmul.f32 %v2954_v47, %v2954_v47 }
  0x99   :  { %v212_v54 = vadd.f32 %v211_v48, %v210_v43  ;;  %v233_v55 = vrot.slane %v232_v49, 4  ;;  %v219_v56 = vadd.f32 %v218_v50, %v217_v52  ;;  %v3044_v43 = vld [vmem:[%s3487_s6] sm:$0xff]  ;;  %v2826_v48 = vmov 1966171168  }
  0x9a   :  { %v240_v57 = vsel %vm208_vm3, %v229_v51, 0.0  ;;  %v239_v58 = vsel %vm206_vm4, %v228_v53, 0.0  ;;  %v2196_v51 = vld [vmem:[%s3483_s2] ss:$0 sm:$0xff]  ;;  %vm1315_vm3 = vcmask 1047559  }
  0x9b   :  { %v213_v59 = vrot.slane %v212_v54, 2  ;;  %v234_v60 = vadd.f32 %v233_v55, %v232_v49  ;;  %v220_v61 = vrot.slane %v219_v56, 4  ;;  %v241_v62 = vadd.f32 %v240_v57, %v239_v58  ;;  %v2197_v55 = vld [vmem:[%s3484_s3] ss:$0 sm:$0xff] }
  0x9c   :  { %v577_v49 = vunpack.c.l.s4 %v2826_v48 }
  0x9d   :  { %v235_v63 = vrot.slane %v234_v60, 2  ;;  %v214_v0 = vadd.f32 %v213_v59, %v212_v54  ;;  %v221_v1 = vadd.f32 %v220_v61, %v219_v56  ;;  %v242_v2 = vrot.slane %v241_v62, 4 }
  0x9e   :  { %v578_v50 = vunpack.c.0.s8 %v577_v49 }
  0x9f   :  { %v222_v3 = vrot.slane %v221_v1, 2  ;;  %v236_v4 = vadd.f32 %v235_v63, %v234_v60  ;;  %v243_v5 = vadd.f32 %v242_v2, %v241_v62  ;;  %v215_v6 = vrot.slane %v214_v0, 1 }
  0xa0   :  { %v581_v52 = vsub.s32 %v578_v50, %v2913_v12 }
  0xa1   :  { %v223_v8 = vadd.f32 %v222_v3, %v221_v1  ;;  %v244_v9 = vrot.slane %v243_v5, 2  ;;  %v237_v11 = vrot.slane %v236_v4, 1  ;;  %v216_v14 = vadd.f32 %v215_v6, %v214_v0 }
  0xa3   :  { %v224_v10 = vrot.slane %v223_v8, 1  ;;  %v245_v13 = vadd.f32 %v244_v9, %v243_v5  ;;  %v238_v19 = vadd.f32 %v237_v11, %v236_v4 }
  0xa5   :  { %v225_v15 = vadd.f32 %v224_v10, %v223_v8  ;;  %v246_v17 = vrot.slane %v245_v13, 1 }
  0xa7   :  { %v251_v18 = vsel %vm250_vm5, %v225_v15, %v216_v14  ;;  %v247_v20 = vadd.f32 %v246_v17, %v245_v13 }
  0xa8   :  { %2376 = vmatmul.mubr.msk.f32.vlgmr.msra.gmra.mxu0 %vm206_vm4, %v251_v18 }
  0xa9   :  { %v328_v21 = vsel %vm250_vm5, %v247_v20, %v238_v19  ;;  %2391 = vmatprep.mubr.msk.f32.mxu0 %vm2825_vm0, %v2824_v7  ;;  %2390 = vmatpush3.msk.msra.mxu0 %vm411_vm6, %v205_v22 }
  0xaa   :  { %2387 = vmatmul.mubr.msk.f32.vlgmr.msra.gmra.mxu1 %vm206_vm4, %v328_v21  ;;  %2399 = vmatprep.subr.mxu0 %v2824_v7 }
  0xab   :  { %2396 = vmatprep.mubr.msk.f32.mxu1 %vm2825_vm0, %v2824_v7  ;;  %2395 = vmatpush3.msk.msra.mxu1 %vm411_vm6, %v205_v22 }
  0xac   :  { %2418 = vmatprep.subr.mxu1 %v2824_v7 }
 0x168   :  { %v320_v23 = vpop.f32.mrf.mxu0 }
 0x169   :  { %v325_v24 = vmul.f32 0.008928572, %v320_v23 }
 0x16a   :  { %v2377_v25 = vpop.f32.mrf.mxu0  ;;  %v397_v26 = vpop.f32.mrf.mxu1 }
 0x16b   :  { %v402_v28 = vmul.f32 %v325_v24, %v325_v24  ;;  %v401_v29 = vmul.f32 0.008928572, %v397_v26  ;;  %2392 = vmatmul.mubr.msk.f32.vlgmr.msra.gmra.mxu0 %vm407_vm7, %v325_v24 }
 0x16c   :  { %v2388_v31 = vpop.f32.mrf.mxu1  ;;  %2415 = vmatprep.mubr.msk.f32.mxu0 %vm2825_vm0, %v2824_v7  ;;  %2400 = vmatpush3.msra.mxu0 %v2986_v36 }
 0x16d   :  { %v403_v32 = vsub.f32 %v401_v29, %v402_v28  ;;  %2401 = vmatprep.subr.mxu0 %v2824_v7 }
 0x16e   :  { %2402 = vmatpush3.msra.mxu0 %v2994_v37 }
 0x16f   :  { %v404_v33 = vmax.f32 %v403_v32, 0.0  ;;  %2403 = vmatprep.subr.mxu0 %v2824_v7  ;;  %v3118_v32 = vld [vmem:[%s3488_s7] ss:$0 sm:$0xff] }
 0x170   :  { %2404 = vmatpush3.msra.mxu0 %v3003_v38 }
 0x171   :  { %v405_v34 = vadd.f32 1e-05, %v404_v33  ;;  %2405 = vmatprep.subr.mxu0 %v2824_v7 }
 0x172   :  { %2406 = vmatpush3.msra.mxu0 %v3012_v39 }
 0x173   :  { %2677 = vrsqrt.f32 %v405_v34  ;;  %2407 = vmatprep.subr.mxu0 %v2824_v7 }
 0x174   :  { %2408 = vmatpush3.msra.mxu0 %v3021_v40 }
 0x175   :  { %2409 = vmatprep.subr.mxu0 %v2824_v7 }
 0x176   :  { %2410 = vmatpush3.msra.mxu0 %v3030_v41 }
 0x177   :  { %2411 = vmatprep.subr.mxu0 %v2824_v7 }
 0x178   :  { %2412 = vmatpush3.msra.mxu0 %v3037_v42 }
 0x179   :  { %2413 = vmatprep.subr.mxu0 %v2824_v7 }
 0x17a   :  { %2414 = vmatpush3.msra.mxu0 %v3044_v43 }
 0x17b   :  { %2437 = vmatprep.subr.mxu0 %v2824_v7 }
 0x180   :  { %v2678_v35 = vpop.eup %2677 }
 0x181   :  { %2397 = vmatmul.mubr.msk.f32.vlgmr.msra.gmra.mxu1 %vm407_vm7, %v2678_v35 }
 0x182   :  { %2434 = vmatprep.mubr.msk.f32.mxu1 %vm2825_vm0, %v2824_v7  ;;  %2419 = vmatpush3.msra.mxu1 %v2986_v36 }
 0x183   :  { %2420 = vmatprep.subr.mxu1 %v2824_v7 }
 0x184   :  { %2421 = vmatpush3.msra.mxu1 %v2994_v37 }
 0x185   :  { %2422 = vmatprep.subr.mxu1 %v2824_v7 }
 0x186   :  { %2423 = vmatpush3.msra.mxu1 %v3003_v38 }
 0x187   :  { %2424 = vmatprep.subr.mxu1 %v2824_v7 }
 0x188   :  { %2425 = vmatpush3.msra.mxu1 %v3012_v39 }
 0x189   :  { %2426 = vmatprep.subr.mxu1 %v2824_v7 }
 0x18a   :  { %2427 = vmatpush3.msra.mxu1 %v3021_v40 }
 0x18b   :  { %2428 = vmatprep.subr.mxu1 %v2824_v7 }
 0x18c   :  { %2429 = vmatpush3.msra.mxu1 %v3030_v41 }
 0x18d   :  { %2430 = vmatprep.subr.mxu1 %v2824_v7 }
 0x18e   :  { %2431 = vmatpush3.msra.mxu1 %v3037_v42 }
 0x18f   :  { %2432 = vmatprep.subr.mxu1 %v2824_v7 }
 0x190   :  { %2433 = vmatpush3.msra.mxu1 %v3044_v43 }
 0x191   :  { %2456 = vmatprep.subr.mxu1 %v2824_v7 }
 0x22b   :  { %v481_v44 = vpop.f32.mrf.mxu0 }
 0x22d   :  { %v2393_v46 = vpop.f32.mrf.mxu0 }
 0x241   :  { %v554_v53 = vpop.f32.mrf.mxu1 }
 0x242   :  { %v565_v54 = vmul.f32 %v2196_v51, %v554_v53 }
 0x243   :  { %v2398_v56 = vpop.f32.mrf.mxu1 }
 0x244   :  { %v567_v57 = vmul.f32 %v565_v54, %v481_v44  ;;  %v582_v58 = vrot.slane %v565_v54, %v581_v52 }
 0x246   :  { %v574_v59 = vsub.f32 %v2197_v55, %v567_v57  ;;  %v583_v60 = vcombine.high %v582_v58, %v582_v58  ;;  %v590_v61 = vrot.slane %v582_v58, %v581_v52 }
 0x248   :  { %v597_v62 = vrot.slane %v583_v60, %v581_v52  ;;  %v619_v63 = vrot.slane %v574_v59, %v581_v52  ;;  %v601_v0 = vrot.slane %v590_v61, %v2921_v16 }
 0x24a   :  { %v605_v1 = vrot.slane %v597_v62, %v2921_v16  ;;  %v620_v2 = vcombine.high %v619_v63, %v619_v63  ;;  %v627_v12 = vrot.slane %v619_v63, %v581_v52  ;;  %v608_v4 = vmul.f32 %v601_v0, %v2937_v30 }
 0x24b   :  { %v609_v5 = vmul.f32 %v601_v0, %v2934_v27 }
 0x24c   :  { %v634_v3 = vrot.slane %v620_v2, %v581_v52  ;;  %v638_v6 = vrot.slane %v627_v12, %v2921_v16  ;;  %v610_v8 = vmul.f32 %v605_v1, %v2954_v47  ;;  %v611_v9 = vmul.f32 %v605_v1, %v2951_v45 }
 0x24e   :  { %v642_v10 = vrot.slane %v634_v3, %v2921_v16  ;;  %v645_v11 = vadd.f32 %v638_v6, %v608_v4  ;;  %v646_v13 = vadd.f32 %v638_v6, %v609_v5 }
 0x250   :  { %v647_v14 = vadd.f32 %v642_v10, %v610_v8  ;;  %v648_v15 = vadd.f32 %v642_v10, %v611_v9  ;;  %v653_v17 = vmul.f32 0.1, %v645_v11  ;;  %vm649_vm10 = vcmp.ge.f32.partialorder %v645_v11, 0.0 }
 0x251   :  { %v654_v30 = vmul.f32 0.1, %v646_v13  ;;  %vm650_vm11 = vcmp.ge.f32.partialorder %v646_v13, 0.0 }
 0x252   :  { %vm651_vm8 = vcmp.ge.f32.partialorder %v647_v14, 0.0  ;;  %vm652_vm9 = vcmp.ge.f32.partialorder %v648_v15, 0.0  ;;  %v655_v18 = vmul.f32 0.1, %v647_v14  ;;  %v656_v19 = vmul.f32 0.1, %v648_v15 }
 0x253   :  { %v3072_v45 = vsel %vm649_vm10, %v645_v11, %v653_v17  ;;  %v658_v23 = vsel %vm650_vm11, %v646_v13, %v654_v30 }
 0x254   :  { %v659_v27 = vsel %vm651_vm8, %v647_v14, %v655_v18  ;;  %v660_v20 = vsel %vm652_vm9, %v648_v15, %v656_v19 }
 0x255   :  { %v3070_v21 = vrot.slane %v659_v27, 7  ;;  %v1535_v47 = vrot.slane %v660_v20, 7 }
 0x257   :  { %v673_v16 = vsel %vm250_vm5, %v3070_v21, %v3072_v45  ;;  %v3080_v24 = vsel %vm250_vm5, %v1535_v47, %v658_v23  ;;  %v3083_v25 = vsel %vm780_vm12, %v1535_v47, %v658_v23  ;;  %v3086_v26 = vsel %vm887_vm14, %v1535_v47, %v658_v23 }
 0x258   :  { %v675_v22 = vsel %vm206_vm4, %v673_v16, 0.0  ;;  %v3089_v28 = vsel %vm994_vm15, %v1535_v47, %v658_v23  ;;  %v3095_v29 = vsel %vm1101_vm1, %v1535_v47, %v658_v23  ;;  %v3098_v31 = vsel %vm1208_vm2, %v1535_v47, %v658_v23 }
 0x259   :  { %2416 = vmatmul.mubr.msk.f32.vlgmr.msra.gmra.mxu0 %vm682_vm13, %v675_v22  ;;  %v781_v60 = vsel %vm780_vm12, %v3070_v21, %v3072_v45  ;;  %v888_v19 = vsel %vm887_vm14, %v3070_v21, %v3072_v45  ;;  %vm1433_vm5 = vcmask 1040384  }
 0x25a   :  { %2438 = vmatpush3.msra.mxu0 %v2986_v36  ;;  %2453 = vmatprep.mubr.msk.f32.mxu0 %vm2825_vm0, %v2824_v7 }
 0x25b   :  { %2439 = vmatprep.subr.mxu0 %v2824_v7 }
 0x25c   :  { %2440 = vmatpush3.msra.mxu0 %v2994_v37 }
 0x25d   :  { %2441 = vmatprep.subr.mxu0 %v2824_v7 }
 0x25e   :  { %2442 = vmatpush3.msra.mxu0 %v3003_v38 }
 0x25f   :  { %2443 = vmatprep.subr.mxu0 %v2824_v7 }
 0x260   :  { %2444 = vmatpush3.msra.mxu0 %v3012_v39 }
 0x261   :  { %2445 = vmatprep.subr.mxu0 %v2824_v7 }
 0x262   :  { %2446 = vmatpush3.msra.mxu0 %v3021_v40 }
 0x263   :  { %2447 = vmatprep.subr.mxu0 %v2824_v7 }
 0x264   :  { %2448 = vmatpush3.msra.mxu0 %v3030_v41 }
 0x265   :  { %2449 = vmatprep.subr.mxu0 %v2824_v7 }
 0x266   :  { %2450 = vmatpush3.msra.mxu0 %v3037_v42 }
 0x267   :  { %2451 = vmatprep.subr.mxu0 %v2824_v7 }
 0x268   :  { %2452 = vmatpush3.msra.mxu0 %v3044_v43 }
 0x269   :  { %2475 = vmatprep.subr.mxu0 %v2824_v7 }
 0x319   :  { %v752_v33 = vpop.f32.mrf.mxu0 }
 0x31a   :  { %v753_v34 = vadd.f32 %v3118_v32, %v752_v33 }
 0x31b   :  { %v2417_v35 = vpop.f32.mrf.mxu0 }
 0x31c   :  { %2679 = vtanh.f32 %v753_v34  ;;  %v2200_v46 = vmul.f32 -1.442695, %v753_v34 }
 0x31e   :  { %2681 = vpow2.f32 %v2200_v46 }
 0x329   :  { %v2680_v44 = vpop.eup %2679 }
 0x32a   :  { %765 = vrot.lane.b32.xlu1 %v2680_v44, %s2827_s18 }
 0x32b   :  { %v2682_v48 = vpop.eup %2681 }
 0x32c   :  { %v759_v49 = vadd.f32 1.0, %v2682_v48 }
 0x32e   :  { %2683 = vrcp.f32 %v759_v49 }
 0x33b   :  { %v2684_v50 = vpop.eup %2683 }
 0x33c   :  { %v763_v53 = vmul.f32 0.0, %v2684_v50 }
 0x39c   :  { %v766_v51 = vpop.permute.xlu1 %765 }
 0x39d   :  { %v768_v52 = vmul.f32 %v2684_v50, %v766_v51 }
 0x39f   :  { %770 = vrot.lane.b32.xlu0 %v768_v52, %s2828_s19 }
 0x411   :  { %v771_v54 = vpop.permute.xlu0 %770 }
 0x412   :  { %v773_v55 = vadd.f32 %v771_v54, %v763_v53 }
 0x414   :  { %2685 = vtanh.f32 %v773_v55 }
 0x421   :  { %v2686_v56 = vpop.eup %2685 }
 0x422   :  { %776 = vrot.lane.b32.xlu1 %v2686_v56, %s2827_s18  ;;  %v995_v56 = vsel %vm994_vm15, %v3070_v21, %v3072_v45 }
 0x494   :  { %v777_v57 = vpop.permute.xlu1 %776 }
 0x495   :  { %v779_v58 = vmul.f32 %v2684_v50, %v777_v57 }
 0x497   :  { %v784_v59 = vrot.slane %v779_v58, 7 }
 0x499   :  { %785 = vrot.lane.b32.xlu0 %v784_v59, %s2827_s18 }
 0x50b   :  { %v786_v61 = vpop.permute.xlu0 %785 }
 0x50c   :  { %v788_v62 = vsel %vm206_vm4, %v781_v60, %v786_v61 }
 0x50d   :  { %v790_v63 = vrot.slane %v788_v62, 1 }
 0x50f   :  { %2435 = vmatmul.mubr.msk.f32.vlgmr.msra.gmra.mxu1 %vm682_vm13, %v790_v63 }
 0x510   :  { %2457 = vmatpush3.msra.mxu1 %v2986_v36  ;;  %2472 = vmatprep.mubr.msk.f32.mxu1 %vm2825_vm0, %v2824_v7 }
 0x511   :  { %2458 = vmatprep.subr.mxu1 %v2824_v7 }
 0x512   :  { %2459 = vmatpush3.msra.mxu1 %v2994_v37 }
 0x513   :  { %2460 = vmatprep.subr.mxu1 %v2824_v7 }
 0x514   :  { %2461 = vmatpush3.msra.mxu1 %v3003_v38 }
 0x515   :  { %2462 = vmatprep.subr.mxu1 %v2824_v7 }
 0x516   :  { %2463 = vmatpush3.msra.mxu1 %v3012_v39 }
 0x517   :  { %2464 = vmatprep.subr.mxu1 %v2824_v7 }
 0x518   :  { %2465 = vmatpush3.msra.mxu1 %v3021_v40 }
 0x519   :  { %2466 = vmatprep.subr.mxu1 %v2824_v7 }
 0x51a   :  { %2467 = vmatpush3.msra.mxu1 %v3030_v41 }
 0x51b   :  { %2468 = vmatprep.subr.mxu1 %v2824_v7 }
 0x51c   :  { %2469 = vmatpush3.msra.mxu1 %v3037_v42 }
 0x51d   :  { %2470 = vmatprep.subr.mxu1 %v2824_v7 }
 0x51e   :  { %2471 = vmatpush3.msra.mxu1 %v3044_v43 }
 0x51f   :  { %2494 = vmatprep.subr.mxu1 %v2824_v7 }
 0x5cf   :  { %v859_v0 = vpop.f32.mrf.mxu1 }
 0x5d0   :  { %v860_v1 = vadd.f32 %v3118_v32, %v859_v0 }
 0x5d1   :  { %v2436_v2 = vpop.f32.mrf.mxu1 }
 0x5d2   :  { %2687 = vtanh.f32 %v860_v1  ;;  %v2202_v3 = vmul.f32 -1.442695, %v860_v1 }
 0x5d4   :  { %2689 = vpow2.f32 %v2202_v3 }
 0x5df   :  { %v2688_v12 = vpop.eup %2687 }
 0x5e0   :  { %872 = vrot.lane.b32.xlu1 %v2688_v12, %s2827_s18 }
 0x5e1   :  { %v2690_v4 = vpop.eup %2689 }
 0x5e2   :  { %v866_v5 = vadd.f32 1.0, %v2690_v4 }
 0x5e4   :  { %2691 = vrcp.f32 %v866_v5 }
 0x5f1   :  { %v2692_v6 = vpop.eup %2691 }
 0x5f2   :  { %v870_v10 = vmul.f32 %v2692_v6, %v773_v55 }
 0x652   :  { %v873_v8 = vpop.permute.xlu1 %872 }
 0x653   :  { %v875_v9 = vmul.f32 %v2692_v6, %v873_v8 }
 0x655   :  { %877 = vrot.lane.b32.xlu0 %v875_v9, %s2828_s19 }
 0x6c7   :  { %v878_v11 = vpop.permute.xlu0 %877 }
 0x6c8   :  { %v880_v13 = vadd.f32 %v878_v11, %v870_v10 }
 0x6ca   :  { %2693 = vtanh.f32 %v880_v13 }
 0x6d7   :  { %v2694_v14 = vpop.eup %2693 }
 0x6d8   :  { %883 = vrot.lane.b32.xlu1 %v2694_v14, %s2827_s18  ;;  %v1102_v14 = vsel %vm1101_vm1, %v3070_v21, %v3072_v45 }
 0x74a   :  { %v884_v15 = vpop.permute.xlu1 %883 }
 0x74b   :  { %v886_v17 = vmul.f32 %v2692_v6, %v884_v15 }
 0x74d   :  { %v891_v18 = vrot.slane %v886_v17, 6 }
 0x74f   :  { %892 = vrot.lane.b32.xlu0 %v891_v18, %s2827_s18 }
 0x7c1   :  { %v893_v30 = vpop.permute.xlu0 %892 }
 0x7c2   :  { %v895_v27 = vsel %vm206_vm4, %v888_v19, %v893_v30 }
 0x7c3   :  { %v897_v20 = vrot.slane %v895_v27, 2 }
 0x7c5   :  { %2454 = vmatmul.mubr.msk.f32.vlgmr.msra.gmra.mxu0 %vm682_vm13, %v897_v20 }
 0x7c6   :  { %2476 = vmatpush3.msra.mxu0 %v2986_v36  ;;  %2491 = vmatprep.mubr.msk.f32.mxu0 %vm2825_vm0, %v2824_v7 }
 0x7c7   :  { %2477 = vmatprep.subr.mxu0 %v2824_v7 }
 0x7c8   :  { %2478 = vmatpush3.msra.mxu0 %v2994_v37 }
 0x7c9   :  { %2479 = vmatprep.subr.mxu0 %v2824_v7 }
 0x7ca   :  { %2480 = vmatpush3.msra.mxu0 %v3003_v38 }
 0x7cb   :  { %2481 = vmatprep.subr.mxu0 %v2824_v7 }
 0x7cc   :  { %2482 = vmatpush3.msra.mxu0 %v3012_v39 }
 0x7cd   :  { %2483 = vmatprep.subr.mxu0 %v2824_v7 }
 0x7ce   :  { %2484 = vmatpush3.msra.mxu0 %v3021_v40 }
 0x7cf   :  { %2485 = vmatprep.subr.mxu0 %v2824_v7 }
 0x7d0   :  { %2486 = vmatpush3.msra.mxu0 %v3030_v41 }
 0x7d1   :  { %2487 = vmatprep.subr.mxu0 %v2824_v7 }
 0x7d2   :  { %2488 = vmatpush3.msra.mxu0 %v3037_v42 }
 0x7d3   :  { %2489 = vmatprep.subr.mxu0 %v2824_v7 }
 0x7d4   :  { %2490 = vmatpush3.msra.mxu0 %v3044_v43 }
 0x7d5   :  { %2513 = vmatprep.subr.mxu0 %v2824_v7 }
 0x885   :  { %v966_v47 = vpop.f32.mrf.mxu0 }
 0x886   :  { %v967_v16 = vadd.f32 %v3118_v32, %v966_v47 }
 0x887   :  { %v2455_v22 = vpop.f32.mrf.mxu0 }
 0x888   :  { %2695 = vtanh.f32 %v967_v16  ;;  %v2204_v33 = vmul.f32 -1.442695, %v967_v16 }
 0x88a   :  { %2697 = vpow2.f32 %v2204_v33 }
 0x895   :  { %v2696_v23 = vpop.eup %2695 }
 0x896   :  { %979 = vrot.lane.b32.xlu1 %v2696_v23, %s2827_s18 }
 0x897   :  { %v2698_v34 = vpop.eup %2697 }
 0x898   :  { %v973_v35 = vadd.f32 1.0, %v2698_v34 }
 0x89a   :  { %2699 = vrcp.f32 %v973_v35 }
 0x8a7   :  { %v2700_v44 = vpop.eup %2699 }
 0x8a8   :  { %v977_v49 = vmul.f32 %v2700_v44, %v880_v13 }
 0x908   :  { %v980_v46 = vpop.permute.xlu1 %979 }
 0x909   :  { %v982_v48 = vmul.f32 %v2700_v44, %v980_v46 }
 0x90b   :  { %984 = vrot.lane.b32.xlu0 %v982_v48, %s2828_s19 }
 0x97d   :  { %v985_v50 = vpop.permute.xlu0 %984 }
 0x97e   :  { %v987_v51 = vadd.f32 %v985_v50, %v977_v49 }
 0x980   :  { %2701 = vtanh.f32 %v987_v51 }
 0x98d   :  { %v2702_v52 = vpop.eup %2701 }
 0x98e   :  { %990 = vrot.lane.b32.xlu1 %v2702_v52, %s2827_s18  ;;  %v1209_v52 = vsel %vm1208_vm2, %v3070_v21, %v3072_v45 }
 0xa00   :  { %v991_v53 = vpop.permute.xlu1 %990 }
 0xa01   :  { %v993_v54 = vmul.f32 %v2700_v44, %v991_v53 }
 0xa03   :  { %v998_v55 = vrot.slane %v993_v54, 5 }
 0xa05   :  { %999 = vrot.lane.b32.xlu0 %v998_v55, %s2827_s18 }
 0xa77   :  { %v1000_v57 = vpop.permute.xlu0 %999 }
 0xa78   :  { %v1002_v58 = vsel %vm206_vm4, %v995_v56, %v1000_v57 }
 0xa79   :  { %v1004_v59 = vrot.slane %v1002_v58, 3 }
 0xa7b   :  { %2473 = vmatmul.mubr.msk.f32.vlgmr.msra.gmra.mxu1 %vm682_vm13, %v1004_v59 }
 0xa7c   :  { %2495 = vmatpush3.msra.mxu1 %v2986_v36  ;;  %2510 = vmatprep.mubr.msk.f32.mxu1 %vm2825_vm0, %v2824_v7 }
 0xa7d   :  { %2496 = vmatprep.subr.mxu1 %v2824_v7 }
 0xa7e   :  { %2497 = vmatpush3.msra.mxu1 %v2994_v37 }
 0xa7f   :  { %2498 = vmatprep.subr.mxu1 %v2824_v7 }
 0xa80   :  { %2499 = vmatpush3.msra.mxu1 %v3003_v38 }
 0xa81   :  { %2500 = vmatprep.subr.mxu1 %v2824_v7 }
 0xa82   :  { %2501 = vmatpush3.msra.mxu1 %v3012_v39 }
 0xa83   :  { %2502 = vmatprep.subr.mxu1 %v2824_v7 }
 0xa84   :  { %2503 = vmatpush3.msra.mxu1 %v3021_v40 }
 0xa85   :  { %2504 = vmatprep.subr.mxu1 %v2824_v7 }
 0xa86   :  { %2505 = vmatpush3.msra.mxu1 %v3030_v41 }
 0xa87   :  { %2506 = vmatprep.subr.mxu1 %v2824_v7 }
 0xa88   :  { %2507 = vmatpush3.msra.mxu1 %v3037_v42 }
 0xa89   :  { %2508 = vmatprep.subr.mxu1 %v2824_v7 }
 0xa8a   :  { %2509 = vmatpush3.msra.mxu1 %v3044_v43 }
 0xa8b   :  { %2532 = vmatprep.subr.mxu1 %v2824_v7 }
 0xb3b   :  { %v1073_v60 = vpop.f32.mrf.mxu1 }
 0xb3c   :  { %v1074_v61 = vadd.f32 %v3118_v32, %v1073_v60 }
 0xb3d   :  { %v2474_v62 = vpop.f32.mrf.mxu1 }
 0xb3e   :  { %2703 = vtanh.f32 %v1074_v61  ;;  %v2206_v0 = vmul.f32 -1.442695, %v1074_v61 }
 0xb40   :  { %2705 = vpow2.f32 %v2206_v0 }
 0xb4b   :  { %v2704_v63 = vpop.eup %2703 }
 0xb4c   :  { %1086 = vrot.lane.b32.xlu1 %v2704_v63, %s2827_s18 }
 0xb4d   :  { %v2706_v1 = vpop.eup %2705 }
 0xb4e   :  { %v1080_v2 = vadd.f32 1.0, %v2706_v1 }
 0xb50   :  { %2707 = vrcp.f32 %v1080_v2 }
 0xb5d   :  { %v2708_v12 = vpop.eup %2707 }
 0xb5e   :  { %v1084_v5 = vmul.f32 %v2708_v12, %v987_v51 }
 0xbbe   :  { %v1087_v3 = vpop.permute.xlu1 %1086 }
 0xbbf   :  { %v1089_v4 = vmul.f32 %v2708_v12, %v1087_v3 }
 0xbc1   :  { %1091 = vrot.lane.b32.xlu0 %v1089_v4, %s2828_s19 }
 0xc33   :  { %v1092_v6 = vpop.permute.xlu0 %1091 }
 0xc34   :  { %v1094_v8 = vadd.f32 %v1092_v6, %v1084_v5 }
 0xc36   :  { %2709 = vtanh.f32 %v1094_v8 }
 0xc43   :  { %v2710_v9 = vpop.eup %2709 }
 0xc44   :  { %1097 = vrot.lane.b32.xlu1 %v2710_v9, %s2827_s18  ;;  %v1316_v9 = vsel %vm1315_vm3, %v3070_v21, %v3072_v45 }
 0xcb6   :  { %v1098_v10 = vpop.permute.xlu1 %1097 }
 0xcb7   :  { %v1100_v11 = vmul.f32 %v2708_v12, %v1098_v10 }
 0xcb9   :  { %v1105_v13 = vrot.slane %v1100_v11, 4 }
 0xcbb   :  { %1106 = vrot.lane.b32.xlu0 %v1105_v13, %s2827_s18 }
 0xd2d   :  { %v1107_v15 = vpop.permute.xlu0 %1106 }
 0xd2e   :  { %v1109_v17 = vsel %vm206_vm4, %v1102_v14, %v1107_v15 }
 0xd2f   :  { %v1111_v18 = vrot.slane %v1109_v17, 4 }
 0xd31   :  { %2492 = vmatmul.mubr.msk.f32.vlgmr.msra.gmra.mxu0 %vm682_vm13, %v1111_v18 }
 0xd32   :  { %2514 = vmatpush3.msra.mxu0 %v2986_v36  ;;  %2529 = vmatprep.mubr.msk.f32.mxu0 %vm2825_vm0, %v2824_v7 }
 0xd33   :  { %2515 = vmatprep.subr.mxu0 %v2824_v7 }
 0xd34   :  { %2516 = vmatpush3.msra.mxu0 %v2994_v37 }
 0xd35   :  { %2517 = vmatprep.subr.mxu0 %v2824_v7 }
 0xd36   :  { %2518 = vmatpush3.msra.mxu0 %v3003_v38 }
 0xd37   :  { %2519 = vmatprep.subr.mxu0 %v2824_v7 }
 0xd38   :  { %2520 = vmatpush3.msra.mxu0 %v3012_v39 }
 0xd39   :  { %2521 = vmatprep.subr.mxu0 %v2824_v7 }
 0xd3a   :  { %2522 = vmatpush3.msra.mxu0 %v3021_v40 }
 0xd3b   :  { %2523 = vmatprep.subr.mxu0 %v2824_v7 }
 0xd3c   :  { %2524 = vmatpush3.msra.mxu0 %v3030_v41 }
 0xd3d   :  { %2525 = vmatprep.subr.mxu0 %v2824_v7 }
 0xd3e   :  { %2526 = vmatpush3.msra.mxu0 %v3037_v42 }
 0xd3f   :  { %2527 = vmatprep.subr.mxu0 %v2824_v7 }
 0xd40   :  { %2528 = vmatpush3.msra.mxu0 %v3044_v43 }
 0xd41   :  { %2551 = vmatprep.subr.mxu0 %v2824_v7 }
 0xdf1   :  { %v1180_v19 = vpop.f32.mrf.mxu0 }
 0xdf2   :  { %v1181_v30 = vadd.f32 %v3118_v32, %v1180_v19 }
 0xdf3   :  { %v2493_v27 = vpop.f32.mrf.mxu0 }
 0xdf4   :  { %2711 = vtanh.f32 %v1181_v30  ;;  %v2208_v47 = vmul.f32 -1.442695, %v1181_v30 }
 0xdf6   :  { %2713 = vpow2.f32 %v2208_v47 }
 0xe01   :  { %v2712_v20 = vpop.eup %2711 }
 0xe02   :  { %1193 = vrot.lane.b32.xlu1 %v2712_v20, %s2827_s18 }
 0xe03   :  { %v2714_v16 = vpop.eup %2713 }
 0xe04   :  { %v1187_v22 = vadd.f32 1.0, %v2714_v16 }
 0xe06   :  { %2715 = vrcp.f32 %v1187_v22 }
 0xe13   :  { %v2716_v23 = vpop.eup %2715 }
 0xe14   :  { %v1191_v35 = vmul.f32 %v2716_v23, %v1094_v8 }
 0xe74   :  { %v1194_v33 = vpop.permute.xlu1 %1193 }
 0xe75   :  { %v1196_v34 = vmul.f32 %v2716_v23, %v1194_v33 }
 0xe77   :  { %1198 = vrot.lane.b32.xlu0 %v1196_v34, %s2828_s19 }
 0xee9   :  { %v1199_v44 = vpop.permute.xlu0 %1198 }
 0xeea   :  { %v1201_v46 = vadd.f32 %v1199_v44, %v1191_v35 }
 0xeec   :  { %2717 = vtanh.f32 %v1201_v46 }
 0xef9   :  { %v2718_v48 = vpop.eup %2717 }
 0xefa   :  { %1204 = vrot.lane.b32.xlu1 %v2718_v48, %s2827_s18 }
 0xf6c   :  { %v1205_v49 = vpop.permute.xlu1 %1204 }
 0xf6d   :  { %v1207_v50 = vmul.f32 %v2716_v23, %v1205_v49 }
 0xf6f   :  { %v1212_v51 = vrot.slane %v1207_v50, 3 }
 0xf71   :  { %1213 = vrot.lane.b32.xlu0 %v1212_v51, %s2827_s18 }
 0xfe3   :  { %v1214_v53 = vpop.permute.xlu0 %1213 }
 0xfe4   :  { %v1216_v54 = vsel %vm206_vm4, %v1209_v52, %v1214_v53 }
 0xfe5   :  { %v1218_v55 = vrot.slane %v1216_v54, 5 }
 0xfe7   :  { %2511 = vmatmul.mubr.msk.f32.vlgmr.msra.gmra.mxu1 %vm682_vm13, %v1218_v55 }
 0xfe8   :  { %2533 = vmatpush3.msra.mxu1 %v2986_v36  ;;  %2548 = vmatprep.mubr.msk.f32.mxu1 %vm2825_vm0, %v2824_v7 }
 0xfe9   :  { %2534 = vmatprep.subr.mxu1 %v2824_v7 }
 0xfea   :  { %2535 = vmatpush3.msra.mxu1 %v2994_v37 }
 0xfeb   :  { %2536 = vmatprep.subr.mxu1 %v2824_v7 }
 0xfec   :  { %2537 = vmatpush3.msra.mxu1 %v3003_v38 }
 0xfed   :  { %2538 = vmatprep.subr.mxu1 %v2824_v7 }
 0xfee   :  { %2539 = vmatpush3.msra.mxu1 %v3012_v39 }
 0xfef   :  { %2540 = vmatprep.subr.mxu1 %v2824_v7 }
 0xff0   :  { %2541 = vmatpush3.msra.mxu1 %v3021_v40 }
 0xff1   :  { %2542 = vmatprep.subr.mxu1 %v2824_v7 }
 0xff2   :  { %2543 = vmatpush3.msra.mxu1 %v3030_v41 }
 0xff3   :  { %2544 = vmatprep.subr.mxu1 %v2824_v7 }
 0xff4   :  { %2545 = vmatpush3.msra.mxu1 %v3037_v42 }
 0xff5   :  { %2546 = vmatprep.subr.mxu1 %v2824_v7 }
 0xff6   :  { %2547 = vmatpush3.msra.mxu1 %v3044_v43 }
 0xff7   :  { %2570 = vmatprep.subr.mxu1 %v2824_v7 }
0x10a7   :  { %v1287_v56 = vpop.f32.mrf.mxu1 }
0x10a8   :  { %v1288_v57 = vadd.f32 %v3118_v32, %v1287_v56 }
0x10a9   :  { %v2512_v58 = vpop.f32.mrf.mxu1 }
0x10aa   :  { %2719 = vtanh.f32 %v1288_v57  ;;  %v2210_v60 = vmul.f32 -1.442695, %v1288_v57 }
0x10ac   :  { %2721 = vpow2.f32 %v2210_v60 }
0x10b7   :  { %v2720_v59 = vpop.eup %2719 }
0x10b8   :  { %1300 = vrot.lane.b32.xlu1 %v2720_v59, %s2827_s18 }
0x10b9   :  { %v2722_v61 = vpop.eup %2721 }
0x10ba   :  { %v1294_v62 = vadd.f32 1.0, %v2722_v61 }
0x10bc   :  { %2723 = vrcp.f32 %v1294_v62 }
0x10c9   :  { %v2724_v63 = vpop.eup %2723 }
0x10ca   :  { %v1298_v2 = vmul.f32 %v2724_v63, %v1201_v46 }
0x112a   :  { %v1301_v0 = vpop.permute.xlu1 %1300 }
0x112b   :  { %v1303_v1 = vmul.f32 %v2724_v63, %v1301_v0 }
0x112d   :  { %1305 = vrot.lane.b32.xlu0 %v1303_v1, %s2828_s19 }
0x119f   :  { %v1306_v12 = vpop.permute.xlu0 %1305 }
0x11a0   :  { %v1308_v3 = vadd.f32 %v1306_v12, %v1298_v2 }
0x11a2   :  { %2725 = vtanh.f32 %v1308_v3 }
0x11af   :  { %v2726_v4 = vpop.eup %2725 }
0x11b0   :  { %1311 = vrot.lane.b32.xlu1 %v2726_v4, %s2827_s18 }
0x1222   :  { %v1312_v5 = vpop.permute.xlu1 %1311 }
0x1223   :  { %v1314_v6 = vmul.f32 %v2724_v63, %v1312_v5 }
0x1225   :  { %v1319_v8 = vrot.slane %v1314_v6, 2 }
0x1227   :  { %1320 = vrot.lane.b32.xlu0 %v1319_v8, %s2827_s18 }
0x1299   :  { %v1321_v10 = vpop.permute.xlu0 %1320 }
0x129a   :  { %v1323_v11 = vsel %vm206_vm4, %v1316_v9, %v1321_v10 }
0x129b   :  { %v1325_v13 = vrot.slane %v1323_v11, 6 }
0x129d   :  { %2530 = vmatmul.mubr.msk.f32.vlgmr.msra.gmra.mxu0 %vm682_vm13, %v1325_v13 }
0x129e   :  { %2552 = vmatpush3.msra.mxu0 %v2986_v36  ;;  %2567 = vmatprep.mubr.msk.f32.mxu0 %vm2825_vm0, %v2824_v7 }
0x129f   :  { %2553 = vmatprep.subr.mxu0 %v2824_v7 }
0x12a0   :  { %2554 = vmatpush3.msra.mxu0 %v2994_v37 }
0x12a1   :  { %2555 = vmatprep.subr.mxu0 %v2824_v7 }
0x12a2   :  { %2556 = vmatpush3.msra.mxu0 %v3003_v38 }
0x12a3   :  { %2557 = vmatprep.subr.mxu0 %v2824_v7 }
0x12a4   :  { %2558 = vmatpush3.msra.mxu0 %v3012_v39 }
0x12a5   :  { %2559 = vmatprep.subr.mxu0 %v2824_v7 }
0x12a6   :  { %2560 = vmatpush3.msra.mxu0 %v3021_v40 }
0x12a7   :  { %2561 = vmatprep.subr.mxu0 %v2824_v7 }
0x12a8   :  { %2562 = vmatpush3.msra.mxu0 %v3030_v41 }
0x12a9   :  { %2563 = vmatprep.subr.mxu0 %v2824_v7 }
0x12aa   :  { %2564 = vmatpush3.msra.mxu0 %v3037_v42 }
0x12ab   :  { %2565 = vmatprep.subr.mxu0 %v2824_v7 }
0x12ac   :  { %2566 = vmatpush3.msra.mxu0 %v3044_v43 }
0x12ad   :  { %2589 = vmatprep.subr.mxu0 %v2824_v7 }
0x135d   :  { %v1394_v14 = vpop.f32.mrf.mxu0 }
0x135e   :  { %v1395_v15 = vadd.f32 %v3118_v32, %v1394_v14 }
0x135f   :  { %v2531_v17 = vpop.f32.mrf.mxu0 }
0x1360   :  { %2727 = vtanh.f32 %v1395_v15  ;;  %v2212_v19 = vmul.f32 -1.442695, %v1395_v15 }
0x1362   :  { %2729 = vpow2.f32 %v2212_v19  ;;  %v3352_v19 = vld [vmem:[%s3487_s6 + $0x38] sm:$0xff] }
0x136d   :  { %v2728_v18 = vpop.eup %2727 }
0x136e   :  { %1407 = vrot.lane.b32.xlu1 %v2728_v18, %s2827_s18 }
0x136f   :  { %v2730_v30 = vpop.eup %2729 }
0x1370   :  { %v1401_v27 = vadd.f32 1.0, %v2730_v30  ;;  %v3361_v30 = vld [vmem:[%s3487_s6 + $0x30] sm:$0xff] }
0x1372   :  { %2731 = vrcp.f32 %v1401_v27  ;;  %v3375_v27 = vld [vmem:[%s3487_s6 + $0x20] sm:$0xff] }
0x137f   :  { %v2732_v20 = vpop.eup %2731 }
0x1380   :  { %v1405_v22 = vmul.f32 %v2732_v20, %v1308_v3 }
0x13e0   :  { %v1408_v47 = vpop.permute.xlu1 %1407 }
0x13e1   :  { %v1410_v16 = vmul.f32 %v2732_v20, %v1408_v47  ;;  %v3389_v47 = vld [vmem:[%s3487_s6 + $0x10] sm:$0xff] }
0x13e3   :  { %1412 = vrot.lane.b32.xlu0 %v1410_v16, %s2828_s19  ;;  %v3396_v16 = vld [vmem:[%s3487_s6 + $0x8] sm:$0xff] }
0x1455   :  { %v1413_v23 = vpop.permute.xlu0 %1412 }
0x1456   :  { %v1415_v33 = vadd.f32 %v1413_v23, %v1405_v22  ;;  %v3403_v22 = vld [vmem:[%s3487_s6] sm:$0xff] }
0x1458   :  { %2733 = vtanh.f32 %v1415_v33 }
0x1465   :  { %v2734_v34 = vpop.eup %2733 }
0x1466   :  { %1418 = vrot.lane.b32.xlu1 %v2734_v34, %s2827_s18 }
0x14d8   :  { %v1419_v35 = vpop.permute.xlu1 %1418 }
0x14d9   :  { %v1421_v44 = vmul.f32 %v2732_v20, %v1419_v35  ;;  %v3382_v20 = vld [vmem:[%s3487_s6 + $0x18] sm:$0xff] }
0x14db   :  { %v1425_v46 = vrot.slane %v1421_v44, 1 }
0x14dd   :  { %1426 = vrot.lane.b32.xlu0 %v1425_v46, %s2827_s18 }
0x154f   :  { %v1427_v48 = vpop.permute.xlu0 %1426 }
0x1550   :  { %v1429_v49 = vsel %vm206_vm4, %v3072_v45, %v1427_v48  ;;  %v1430_v50 = vsel %vm206_vm4, %v3070_v21, %v1427_v48 }
0x1551   :  { %v1434_v51 = vrot.slane %v1429_v49, 7  ;;  %v1435_v52 = vrot.slane %v1430_v50, 7 }
0x1553   :  { %v1436_v53 = vsel %vm1433_vm5, %v1434_v51, %v1435_v52 }
0x1554   :  { %2549 = vmatmul.mubr.msk.f32.vlgmr.msra.gmra.mxu1 %vm682_vm13, %v1436_v53 }
0x1555   :  { %2571 = vmatpush3.msra.mxu1 %v2986_v36  ;;  %2586 = vmatprep.mubr.msk.f32.mxu1 %vm2825_vm0, %v2824_v7 }
0x1556   :  { %2572 = vmatprep.subr.mxu1 %v2824_v7 }
0x1557   :  { %2573 = vmatpush3.msra.mxu1 %v2994_v37 }
0x1558   :  { %2574 = vmatprep.subr.mxu1 %v2824_v7 }
0x1559   :  { %2575 = vmatpush3.msra.mxu1 %v3003_v38 }
0x155a   :  { %2576 = vmatprep.subr.mxu1 %v2824_v7 }
0x155b   :  { %2577 = vmatpush3.msra.mxu1 %v3012_v39 }
0x155c   :  { %2578 = vmatprep.subr.mxu1 %v2824_v7 }
0x155d   :  { %2579 = vmatpush3.msra.mxu1 %v3021_v40 }
0x155e   :  { %2580 = vmatprep.subr.mxu1 %v2824_v7 }
0x155f   :  { %2581 = vmatpush3.msra.mxu1 %v3030_v41 }
0x1560   :  { %2582 = vmatprep.subr.mxu1 %v2824_v7 }
0x1561   :  { %2583 = vmatpush3.msra.mxu1 %v3037_v42 }
0x1562   :  { %2584 = vmatprep.subr.mxu1 %v2824_v7 }
0x1563   :  { %2585 = vmatpush3.msra.mxu1 %v3044_v43 }
0x1564   :  { %2608 = vmatprep.subr.mxu1 %v2824_v7 }
0x1614   :  { %v1505_v21 = vpop.f32.mrf.mxu1 }
0x1615   :  { %v1506_v45 = vadd.f32 %v3118_v32, %v1505_v21 }
0x1616   :  { %v2550_v54 = vpop.f32.mrf.mxu1 }
0x1617   :  { %2735 = vtanh.f32 %v1506_v45  ;;  %v2214_v56 = vmul.f32 -1.442695, %v1506_v45 }
0x1619   :  { %2737 = vpow2.f32 %v2214_v56 }
0x1624   :  { %v2736_v55 = vpop.eup %2735 }
0x1625   :  { %1518 = vrot.lane.b32.xlu1 %v2736_v55, %s2827_s18 }
0x1626   :  { %v2738_v57 = vpop.eup %2737 }
0x1627   :  { %v1512_v58 = vadd.f32 1.0, %v2738_v57 }
0x1629   :  { %2739 = vrcp.f32 %v1512_v58 }
0x1636   :  { %v2740_v59 = vpop.eup %2739 }
0x1637   :  { %v1516_v62 = vmul.f32 %v2740_v59, %v1415_v33 }
0x1697   :  { %v1519_v60 = vpop.permute.xlu1 %1518 }
0x1698   :  { %v1521_v61 = vmul.f32 %v2740_v59, %v1519_v60 }
0x169a   :  { %1523 = vrot.lane.b32.xlu0 %v1521_v61, %s2828_s19 }
0x170c   :  { %v1524_v63 = vpop.permute.xlu0 %1523 }
0x170d   :  { %v1526_v0 = vadd.f32 %v1524_v63, %v1516_v62 }
0x170f   :  { %2741 = vtanh.f32 %v1526_v0 }
0x171c   :  { %v2742_v1 = vpop.eup %2741 }
0x171d   :  { %1529 = vrot.lane.b32.xlu1 %v2742_v1, %s2827_s18 }
0x178f   :  { %v1530_v2 = vpop.permute.xlu1 %1529 }
0x1790   :  { %v1532_v12 = vmul.f32 %v2740_v59, %v1530_v2 }
0x1792   :  { %1539 = vrot.lane.b32.xlu0 %v1532_v12, %s2827_s18 }
0x1804   :  { %v1540_v3 = vpop.permute.xlu0 %1539 }
0x1805   :  { %v1542_v4 = vsel %vm206_vm4, %v3080_v24, %v1540_v3 }
0x1806   :  { %2568 = vmatmul.mubr.msk.f32.vlgmr.msra.gmra.mxu0 %vm682_vm13, %v1542_v4 }
0x1807   :  { %2590 = vmatpush3.msra.mxu0 %v2986_v36  ;;  %2605 = vmatprep.mubr.msk.f32.mxu0 %vm2825_vm0, %v2824_v7 }
0x1808   :  { %2591 = vmatprep.subr.mxu0 %v2824_v7 }
0x1809   :  { %2592 = vmatpush3.msra.mxu0 %v2994_v37 }
0x180a   :  { %2593 = vmatprep.subr.mxu0 %v2824_v7 }
0x180b   :  { %2594 = vmatpush3.msra.mxu0 %v3003_v38 }
0x180c   :  { %2595 = vmatprep.subr.mxu0 %v2824_v7 }
0x180d   :  { %2596 = vmatpush3.msra.mxu0 %v3012_v39 }
0x180e   :  { %2597 = vmatprep.subr.mxu0 %v2824_v7 }
0x180f   :  { %2598 = vmatpush3.msra.mxu0 %v3021_v40 }
0x1810   :  { %2599 = vmatprep.subr.mxu0 %v2824_v7 }
0x1811   :  { %2600 = vmatpush3.msra.mxu0 %v3030_v41 }
0x1812   :  { %2601 = vmatprep.subr.mxu0 %v2824_v7 }
0x1813   :  { %2602 = vmatpush3.msra.mxu0 %v3037_v42 }
0x1814   :  { %2603 = vmatprep.subr.mxu0 %v2824_v7 }
0x1815   :  { %2604 = vmatpush3.msra.mxu0 %v3044_v43 }
0x1816   :  { %2627 = vmatprep.subr.mxu0 %v2824_v7 }
0x18c6   :  { %v1612_v36 = vpop.f32.mrf.mxu0 }
0x18c7   :  { %v1613_v37 = vadd.f32 %v3118_v32, %v1612_v36 }
0x18c8   :  { %v2569_v38 = vpop.f32.mrf.mxu0 }
0x18c9   :  { %2743 = vtanh.f32 %v1613_v37  ;;  %v2216_v40 = vmul.f32 -1.442695, %v1613_v37 }
0x18cb   :  { %2745 = vpow2.f32 %v2216_v40 }
0x18d6   :  { %v2744_v39 = vpop.eup %2743 }
0x18d7   :  { %1625 = vrot.lane.b32.xlu1 %v2744_v39, %s2827_s18 }
0x18d8   :  { %v2746_v41 = vpop.eup %2745 }
0x18d9   :  { %v1619_v24 = vadd.f32 1.0, %v2746_v41 }
0x18db   :  { %2747 = vrcp.f32 %v1619_v24 }
0x18e8   :  { %v2748_v42 = vpop.eup %2747 }
0x18e9   :  { %v1623_v43 = vmul.f32 %v2748_v42, %v1526_v0 }
0x1949   :  { %v1626_v5 = vpop.permute.xlu1 %1625 }
0x194a   :  { %v1628_v6 = vmul.f32 %v2748_v42, %v1626_v5  ;;  %v2799_v5 = vld [vmem:[%s3488_s7] ss:$0 sm:$0xff]  ;;  %s2829_s7 = smov [#allocation2]  }
0x194b   :  { %s2182_s12 = sshll.u32 %s2829_s7, 4  ;;  %s2183_s12 = int_to_ptr.vmem [resolvable:$true] %s2182_s12 }
0x194c   :  { %1630 = vrot.lane.b32.xlu0 %v1628_v6, %s2828_s19  ;;  %s2800_s13 = scalar_lea.vmem %s2183_s12, 32  ;;  %p2805_p1 = scmp.lt.s32.totalorder %s2183_s12, %s2183_s12 }
0x194d   :  { %p2801_p0 = scmp.ne.s32.totalorder %s2183_s12, %s2800_s13  ;;  %p2806_p2 = scmp.lt.s32.totalorder %s2800_s13, %s2800_s13 }
0x194f   :  { %p2807_p3 = por %p2806_p2, %p2805_p1 }
0x1951   :  { %p2808_p4 = pnand %p2807_p3, %p2801_p0 }
0x19be   :  { %v1631_v8 = vpop.permute.xlu0 %1630 }
0x19bf   :  { %v1633_v9 = vadd.f32 %v1631_v8, %v1623_v43 }
0x19c1   :  { %2749 = vtanh.f32 %v1633_v9 }
0x19ce   :  { %v2750_v10 = vpop.eup %2749 }
0x19cf   :  { %1636 = vrot.lane.b32.xlu1 %v2750_v10, %s2827_s18 }
0x1a41   :  { %v1637_v11 = vpop.permute.xlu1 %1636 }
0x1a42   :  { %v1639_v13 = vmul.f32 %v2748_v42, %v1637_v11 }
0x1a44   :  { %v1643_v14 = vrot.slane %v1639_v13, 7 }
0x1a46   :  { %1644 = vrot.lane.b32.xlu0 %v1643_v14, %s2827_s18 }
0x1ab8   :  { %v1645_v15 = vpop.permute.xlu0 %1644 }
0x1ab9   :  { %v1647_v17 = vsel %vm206_vm4, %v3083_v25, %v1645_v15  ;;  %v3368_v25 = vld [vmem:[%s3487_s6 + $0x28] sm:$0xff] }
0x1aba   :  { %v1649_v18 = vrot.slane %v1647_v17, 1 }
0x1abc   :  { %2587 = vmatmul.mubr.msk.f32.vlgmr.msra.gmra.mxu1 %vm682_vm13, %v1649_v18 }
0x1abd   :  { %2609 = vmatpush3.msra.mxu1 %v3352_v19  ;;  %2624 = vmatprep.mubr.msk.f32.mxu1 %vm2825_vm0, %v2824_v7 }
0x1abe   :  { %2610 = vmatprep.subr.mxu1 %v2824_v7 }
0x1abf   :  { %2611 = vmatpush3.msra.mxu1 %v3361_v30 }
0x1ac0   :  { %2612 = vmatprep.subr.mxu1 %v2824_v7 }
0x1ac1   :  { %2613 = vmatpush3.msra.mxu1 %v3368_v25 }
0x1ac2   :  { %2614 = vmatprep.subr.mxu1 %v2824_v7 }
0x1ac3   :  { %2615 = vmatpush3.msra.mxu1 %v3375_v27 }
0x1ac4   :  { %2616 = vmatprep.subr.mxu1 %v2824_v7 }
0x1ac5   :  { %2617 = vmatpush3.msra.mxu1 %v3382_v20 }
0x1ac6   :  { %2618 = vmatprep.subr.mxu1 %v2824_v7 }
0x1ac7   :  { %2619 = vmatpush3.msra.mxu1 %v3389_v47 }
0x1ac8   :  { %2620 = vmatprep.subr.mxu1 %v2824_v7 }
0x1ac9   :  { %2621 = vmatpush3.msra.mxu1 %v3396_v16 }
0x1aca   :  { %2622 = vmatprep.subr.mxu1 %v2824_v7 }
0x1acb   :  { %2623 = vmatpush3.msra.mxu1 %v3403_v22 }
0x1acc   :  { %2646 = vmatprep.subr.mxu1 %v2824_v7 }
0x1b7c   :  { %v1718_v23 = vpop.f32.mrf.mxu1 }
0x1b7d   :  { %v1719_v33 = vadd.f32 %v3118_v32, %v1718_v23 }
0x1b7e   :  { %v2588_v34 = vpop.f32.mrf.mxu1 }
0x1b7f   :  { %2751 = vtanh.f32 %v1719_v33  ;;  %v2218_v44 = vmul.f32 -1.442695, %v1719_v33 }
0x1b81   :  { %2753 = vpow2.f32 %v2218_v44 }
0x1b8c   :  { %v2752_v35 = vpop.eup %2751 }
0x1b8d   :  { %1731 = vrot.lane.b32.xlu1 %v2752_v35, %s2827_s18 }
0x1b8e   :  { %v2754_v46 = vpop.eup %2753 }
0x1b8f   :  { %v1725_v48 = vadd.f32 1.0, %v2754_v46 }
0x1b91   :  { %2755 = vrcp.f32 %v1725_v48 }
0x1b9e   :  { %v2756_v49 = vpop.eup %2755 }
0x1b9f   :  { %v1729_v52 = vmul.f32 %v2756_v49, %v1633_v9 }
0x1bff   :  { %v1732_v50 = vpop.permute.xlu1 %1731 }
0x1c00   :  { %v1734_v51 = vmul.f32 %v2756_v49, %v1732_v50 }
0x1c02   :  { %1736 = vrot.lane.b32.xlu0 %v1734_v51, %s2828_s19 }
0x1c74   :  { %v1737_v53 = vpop.permute.xlu0 %1736 }
0x1c75   :  { %v1739_v21 = vadd.f32 %v1737_v53, %v1729_v52 }
0x1c77   :  { %2757 = vtanh.f32 %v1739_v21 }
0x1c84   :  { %v2758_v45 = vpop.eup %2757 }
0x1c85   :  { %1742 = vrot.lane.b32.xlu1 %v2758_v45, %s2827_s18 }
0x1cf7   :  { %v1743_v54 = vpop.permute.xlu1 %1742 }
0x1cf8   :  { %v1745_v55 = vmul.f32 %v2756_v49, %v1743_v54 }
0x1cfa   :  { %v1749_v56 = vrot.slane %v1745_v55, 6 }
0x1cfc   :  { %1750 = vrot.lane.b32.xlu0 %v1749_v56, %s2827_s18 }
0x1d6e   :  { %v1751_v57 = vpop.permute.xlu0 %1750 }
0x1d6f   :  { %v1753_v58 = vsel %vm206_vm4, %v3086_v26, %v1751_v57 }
0x1d70   :  { %v1755_v59 = vrot.slane %v1753_v58, 2 }
0x1d72   :  { %2606 = vmatmul.mubr.msk.f32.vlgmr.msra.gmra.mxu0 %vm682_vm13, %v1755_v59 }
0x1d73   :  { %2628 = vmatpush3.msra.mxu0 %v3352_v19  ;;  %2643 = vmatprep.mubr.msk.f32.mxu0 %vm2825_vm0, %v2824_v7 }
0x1d74   :  { %2629 = vmatprep.subr.mxu0 %v2824_v7 }
0x1d75   :  { %2630 = vmatpush3.msra.mxu0 %v3361_v30 }
0x1d76   :  { %2631 = vmatprep.subr.mxu0 %v2824_v7 }
0x1d77   :  { %2632 = vmatpush3.msra.mxu0 %v3368_v25 }
0x1d78   :  { %2633 = vmatprep.subr.mxu0 %v2824_v7 }
0x1d79   :  { %2634 = vmatpush3.msra.mxu0 %v3375_v27 }
0x1d7a   :  { %2635 = vmatprep.subr.mxu0 %v2824_v7 }
0x1d7b   :  { %2636 = vmatpush3.msra.mxu0 %v3382_v20 }
0x1d7c   :  { %2637 = vmatprep.subr.mxu0 %v2824_v7 }
0x1d7d   :  { %2638 = vmatpush3.msra.mxu0 %v3389_v47 }
0x1d7e   :  { %2639 = vmatprep.subr.mxu0 %v2824_v7 }
0x1d7f   :  { %2640 = vmatpush3.msra.mxu0 %v3396_v16 }
0x1d80   :  { %2641 = vmatprep.subr.mxu0 %v2824_v7 }
0x1d81   :  { %2642 = vmatpush3.msra.mxu0 %v3403_v22 }
0x1e32   :  { %v1824_v26 = vpop.f32.mrf.mxu0 }
0x1e33   :  { %v1825_v60 = vadd.f32 %v3118_v32, %v1824_v26 }
0x1e34   :  { %v2607_v61 = vpop.f32.mrf.mxu0 }
0x1e35   :  { %2759 = vtanh.f32 %v1825_v60  ;;  %v2220_v63 = vmul.f32 -1.442695, %v1825_v60 }
0x1e37   :  { %2761 = vpow2.f32 %v2220_v63 }
0x1e42   :  { %v2760_v62 = vpop.eup %2759 }
0x1e43   :  { %1837 = vrot.lane.b32.xlu1 %v2760_v62, %s2827_s18 }
0x1e44   :  { %v2762_v0 = vpop.eup %2761 }
0x1e45   :  { %v1831_v1 = vadd.f32 1.0, %v2762_v0 }
0x1e47   :  { %2763 = vrcp.f32 %v1831_v1 }
0x1e54   :  { %v2764_v2 = vpop.eup %2763 }
0x1e55   :  { %v1835_v4 = vmul.f32 %v2764_v2, %v1739_v21 }
0x1eb5   :  { %v1838_v12 = vpop.permute.xlu1 %1837 }
0x1eb6   :  { %v1840_v3 = vmul.f32 %v2764_v2, %v1838_v12 }
0x1eb8   :  { %1842 = vrot.lane.b32.xlu0 %v1840_v3, %s2828_s19 }
0x1f2a   :  { %v1843_v36 = vpop.permute.xlu0 %1842 }
0x1f2b   :  { %v1845_v37 = vadd.f32 %v1843_v36, %v1835_v4 }
0x1f2d   :  { %2765 = vtanh.f32 %v1845_v37 }
0x1f3a   :  { %v2766_v32 = vpop.eup %2765 }
0x1f3b   :  { %1848 = vrot.lane.b32.xlu1 %v2766_v32, %s2827_s18 }
0x1fad   :  { %v1849_v38 = vpop.permute.xlu1 %1848 }
0x1fae   :  { %v1851_v39 = vmul.f32 %v2764_v2, %v1849_v38 }
0x1fb0   :  { %v1855_v40 = vrot.slane %v1851_v39, 5 }
0x1fb2   :  { %1856 = vrot.lane.b32.xlu0 %v1855_v40, %s2827_s18 }
0x2024   :  { %v1857_v41 = vpop.permute.xlu0 %1856 }
0x2025   :  { %v1859_v24 = vsel %vm206_vm4, %v3089_v28, %v1857_v41 }
0x2026   :  { %v1861_v42 = vrot.slane %v1859_v24, 3 }
0x2028   :  { %2625 = vmatmul.mubr.msk.f32.vlgmr.msra.gmra.mxu1 %vm682_vm13, %v1861_v42 }
0x2029   :  { %2647 = vmatpush3.msra.mxu1 %v3352_v19  ;;  %2662 = vmatprep.mubr.msk.f32.mxu1 %vm2825_vm0, %v2824_v7  ;;  %vm2174_vm0 = vcmask 254976  }
0x202a   :  { %2648 = vmatprep.subr.mxu1 %v2824_v7 }
0x202b   :  { %2649 = vmatpush3.msra.mxu1 %v3361_v30 }
0x202c   :  { %2650 = vmatprep.subr.mxu1 %v2824_v7 }
0x202d   :  { %2651 = vmatpush3.msra.mxu1 %v3368_v25 }
0x202e   :  { %2652 = vmatprep.subr.mxu1 %v2824_v7 }
0x202f   :  { %2653 = vmatpush3.msra.mxu1 %v3375_v27 }
0x2030   :  { %2654 = vmatprep.subr.mxu1 %v2824_v7 }
0x2031   :  { %2655 = vmatpush3.msra.mxu1 %v3382_v20 }
0x2032   :  { %2656 = vmatprep.subr.mxu1 %v2824_v7 }
0x2033   :  { %2657 = vmatpush3.msra.mxu1 %v3389_v47 }
0x2034   :  { %2658 = vmatprep.subr.mxu1 %v2824_v7 }
0x2035   :  { %2659 = vmatpush3.msra.mxu1 %v3396_v16 }
0x2036   :  { %2660 = vmatprep.subr.mxu1 %v2824_v7 }
0x2037   :  { %2661 = vmatpush3.msra.mxu1 %v3403_v22 }
0x20e8   :  { %v1930_v28 = vpop.f32.mrf.mxu1 }
0x20e9   :  { %v1931_v6 = vadd.f32 %v2799_v5, %v1930_v28 }
0x20ea   :  { %v2626_v43 = vpop.f32.mrf.mxu1 }
0x20eb   :  { %2767 = vtanh.f32 %v1931_v6  ;;  %v2222_v9 = vmul.f32 -1.442695, %v1931_v6 }
0x20ed   :  { %2769 = vpow2.f32 %v2222_v9 }
0x20f8   :  { %v2768_v8 = vpop.eup %2767 }
0x20f9   :  { %1943 = vrot.lane.b32.xlu1 %v2768_v8, %s2827_s18 }
0x20fa   :  { %v2770_v10 = vpop.eup %2769 }
0x20fb   :  { %v1937_v11 = vadd.f32 1.0, %v2770_v10 }
0x20fd   :  { %2771 = vrcp.f32 %v1937_v11 }
0x210a   :  { %v2772_v13 = vpop.eup %2771 }
0x210b   :  { %v1941_v15 = vmul.f32 %v2772_v13, %v1845_v37 }
0x216b   :  { %v1944_v7 = vpop.permute.xlu1 %1943 }
0x216c   :  { %v1946_v14 = vmul.f32 %v2772_v13, %v1944_v7 }
0x216e   :  { %1948 = vrot.lane.b32.xlu0 %v1946_v14, %s2828_s19 }
0x21e0   :  { %v1949_v17 = vpop.permute.xlu0 %1948 }
0x21e1   :  { %v1951_v18 = vadd.f32 %v1949_v17, %v1941_v15 }
0x21e3   :  { %2773 = vtanh.f32 %v1951_v18 }
0x21f0   :  { %v2774_v19 = vpop.eup %2773 }
0x21f1   :  { %1954 = vrot.lane.b32.xlu1 %v2774_v19, %s2827_s18 }
0x2263   :  { %v1955_v30 = vpop.permute.xlu1 %1954 }
0x2264   :  { %v1957_v25 = vmul.f32 %v2772_v13, %v1955_v30 }
0x2266   :  { %v1961_v27 = vrot.slane %v1957_v25, 4 }
0x2268   :  { %1962 = vrot.lane.b32.xlu0 %v1961_v27, %s2827_s18 }
0x22da   :  { %v1963_v20 = vpop.permute.xlu0 %1962 }
0x22db   :  { %v1965_v47 = vsel %vm206_vm4, %v3095_v29, %v1963_v20 }
0x22dc   :  { %v1967_v16 = vrot.slane %v1965_v47, 4 }
0x22de   :  { %2644 = vmatmul.mubr.msk.f32.vlgmr.msra.gmra.mxu0 %vm682_vm13, %v1967_v16 }
0x239e   :  { %v2036_v22 = vpop.f32.mrf.mxu0 }
0x239f   :  { %v2037_v23 = vadd.f32 %v2799_v5, %v2036_v22 }
0x23a0   :  { %v2645_v33 = vpop.f32.mrf.mxu0 }
0x23a1   :  { %2775 = vtanh.f32 %v2037_v23  ;;  %v2224_v35 = vmul.f32 -1.442695, %v2037_v23 }
0x23a3   :  { %2777 = vpow2.f32 %v2224_v35 }
0x23ae   :  { %v2776_v34 = vpop.eup %2775 }
0x23af   :  { %2049 = vrot.lane.b32.xlu1 %v2776_v34, %s2827_s18 }
0x23b0   :  { %v2778_v44 = vpop.eup %2777 }
0x23b1   :  { %v2043_v46 = vadd.f32 1.0, %v2778_v44 }
0x23b3   :  { %2779 = vrcp.f32 %v2043_v46 }
0x23c0   :  { %v2780_v48 = vpop.eup %2779 }
0x23c1   :  { %v2047_v29 = vmul.f32 %v2780_v48, %v1951_v18 }
0x2421   :  { %v2050_v49 = vpop.permute.xlu1 %2049 }
0x2422   :  { %v2052_v50 = vmul.f32 %v2780_v48, %v2050_v49 }
0x2424   :  { %2054 = vrot.lane.b32.xlu0 %v2052_v50, %s2828_s19 }
0x2496   :  { %v2055_v51 = vpop.permute.xlu0 %2054 }
0x2497   :  { %v2057_v52 = vadd.f32 %v2055_v51, %v2047_v29 }
0x2499   :  { %2781 = vtanh.f32 %v2057_v52 }
0x24a6   :  { %v2782_v53 = vpop.eup %2781 }
0x24a7   :  { %2060 = vrot.lane.b32.xlu1 %v2782_v53, %s2827_s18 }
0x2519   :  { %v2061_v21 = vpop.permute.xlu1 %2060 }
0x251a   :  { %v2063_v45 = vmul.f32 %v2780_v48, %v2061_v21 }
0x251c   :  { %v2067_v54 = vrot.slane %v2063_v45, 3 }
0x251e   :  { %2068 = vrot.lane.b32.xlu0 %v2067_v54, %s2827_s18 }
0x2590   :  { %v2069_v55 = vpop.permute.xlu0 %2068 }
0x2591   :  { %v2071_v56 = vsel %vm206_vm4, %v3098_v31, %v2069_v55 }
0x2592   :  { %v2073_v57 = vrot.slane %v2071_v56, 5 }
0x2594   :  { %2663 = vmatmul.mubr.msk.f32.vlgmr.msra.gmra.mxu1 %vm682_vm13, %v2073_v57 }
0x2654   :  { %v2142_v58 = vpop.f32.mrf.mxu1 }
0x2655   :  { %v2143_v59 = vadd.f32 %v2799_v5, %v2142_v58 }
0x2656   :  { %v2664_v26 = vpop.f32.mrf.mxu1 }
0x2657   :  { %2783 = vtanh.f32 %v2143_v59  ;;  %v2226_v61 = vmul.f32 -1.442695, %v2143_v59 }
0x2659   :  { %2785 = vpow2.f32 %v2226_v61 }
0x2664   :  { %v2784_v60 = vpop.eup %2783 }
0x2665   :  { %2155 = vrot.lane.b32.xlu1 %v2784_v60, %s2827_s18 }
0x2666   :  { %v2786_v62 = vpop.eup %2785 }
0x2667   :  { %v2149_v63 = vadd.f32 1.0, %v2786_v62 }
0x2669   :  { %2787 = vrcp.f32 %v2149_v63 }
0x2676   :  { %v2788_v0 = vpop.eup %2787 }
0x2677   :  { %v2153_v31 = vmul.f32 %v2788_v0, %v2057_v52 }
0x26d7   :  { %v2156_v1 = vpop.permute.xlu1 %2155 }
0x26d8   :  { %v2158_v2 = vmul.f32 %v2788_v0, %v2156_v1 }
0x26da   :  { %2160 = vrot.lane.b32.xlu0 %v2158_v2, %s2828_s19 }
0x274c   :  { %v2161_v12 = vpop.permute.xlu0 %2160 }
0x274d   :  { %v2163_v3 = vadd.f32 %v2161_v12, %v2153_v31 }
0x274f   :  { %2789 = vtanh.f32 %v2163_v3 }
0x275c   :  { %v2790_v4 = vpop.eup %2789 }
0x275d   :  { %2166 = vrot.lane.b32.xlu1 %v2790_v4, %s2827_s18 }
0x27cf   :  { %v2167_v36 = vpop.permute.xlu1 %2166 }
0x27d0   :  { %v2169_v37 = vmul.f32 %v2788_v0, %v2167_v36 }
0x27d2   :  { %2171 = vrot.lane.b32.xlu0 %v2169_v37, %s2828_s19 }
0x2844   :  { %v2172_v32 = vpop.permute.xlu0 %2171 }
0x2845   :  { %2175 = vst.msk [vmem:[#allocation2] sm:$0x3] %vm2174_vm0, %v2172_v32 }
0x2846   :  { %2811 = shalt.err (!%p2808_p4)
}
0x2847   :  { %2185 = dma.vmem_to_hbm [thread:$0]  %s2183_s12, 32, %s3489_s8, [#allocation3]  }
0x2848   :  { %2820 = dma.done.wait [#allocation3], 32  }
0x2849   :  { %2821 = vsyncadd [#allocation3], 4294967264 }
0x284a   :  { %2189 = vsyncpa [#allocation3], 1 }

</bundles_post_ra>
